<compile_context>
chip_gen: v7x
topology: tpu7x:2x2x1
jax: 0.10.0
libtpu: 0.0.40
codegen_flags: <defaults>
</compile_context>

<pallas_src>
import jax
import jax.numpy as jnp
from jax import lax
from jax.experimental import pallas as pl

D_MODEL = 32
N_HEADS = 4
D_K = D_MODEL // N_HEADS
D_FF = 64
EPS = 1e-6
NEG = -1e9  # matches masked_fill(mask == 0, -1e9)


# ---------------------------------------------------------------------------
# in-kernel helpers (pure jnp/lax, traced inside the Pallas kernel)
# ---------------------------------------------------------------------------
def _layernorm(x, g, b):
    # Annotated-Transformer LayerNorm: a_2*(x-mean)/(std+eps)+b_2, unbiased std (N-1).
    mean = jnp.mean(x, axis=-1, keepdims=True)
    d = x - mean
    var = jnp.sum(d * d, axis=-1, keepdims=True) * (1.0 / (x.shape[-1] - 1))
    inv_std = pl.reciprocal(jnp.sqrt(var) + EPS, approx=True)   # EUP, not VPU divide
    return g * (d * inv_std) + b


def _stack_heads(z):
    # (rows, D) f32, heads side-by-side on lanes -> (H, rows, D_K) bf16 for batched dots
    return jnp.stack(
        [z[:, h * D_K:(h + 1) * D_K] for h in range(N_HEADS)], axis=0
    ).astype(jnp.bfloat16)


def _mha(q, k, v, keep_masks, wo16, bo, B, Tq, Tk):
    """Multi-head attention with the head loop batched into single dot_generals.

    q: (B*Tq, D) f32;  k, v: (B*Tk, D) f32  (heads on lanes)
    keep_masks: list of B boolean arrays broadcastable against (H, Tq, Tk)
    wo16: (D, D) bf16;  bo: (D,) f32.  Returns (B*Tq, D) f32.
    """
    scale = D_K ** -0.5
    qh = _stack_heads(q)   # (H, B*Tq, Dk) bf16
    kh = _stack_heads(k)   # (H, B*Tk, Dk) bf16
    vh = _stack_heads(v)   # (H, B*Tk, Dk) bf16

    outs = []
    for b in range(B):     # static loop; B=2
        qb = qh[:, b * Tq:(b + 1) * Tq, :]
        kb = kh[:, b * Tk:(b + 1) * Tk, :]
        vb = vh[:, b * Tk:(b + 1) * Tk, :]

        # all heads in ONE batched dot_general (no materialized transpose)
        s = jnp.einsum('hqd,hkd->hqk', qb, kb,
                       preferred_element_type=jnp.float32) * scale
        s = jnp.where(keep_masks[b], s, NEG)          # == masked_fill(mask==0, -1e9)

        # one softmax per attention per batch (not per head)
        m = jnp.max(s, axis=-1, keepdims=True)
        p = jnp.exp(s - m)
        p = p * pl.reciprocal(jnp.sum(p, axis=-1, keepdims=True), approx=True)
        # TODO(synk): attention dropout is identity (eval mode / p=0).

        ctx = jnp.einsum('hqk,hkd->hqd', p.astype(jnp.bfloat16), vb,
                         preferred_element_type=jnp.float32)   # (H, Tq, Dk)

        # head-concat folded into Wo: accumulate ctx_h @ Wo[h*Dk:(h+1)*Dk, :]
        ob = bo
        for h in range(N_HEADS):
            ob = ob + jnp.dot(ctx[h].astype(jnp.bfloat16),
                              wo16[h * D_K:(h + 1) * D_K, :],
                              preferred_element_type=jnp.float32)
        outs.append(ob)
    return jnp.concatenate(outs, axis=0)   # (B*Tq, D)


# ---------------------------------------------------------------------------
# Wrapper: one pallas_call, no grid, 6 packed input streams
# ---------------------------------------------------------------------------
def decoder_layer(x, memory, src_mask, params):
    """DecoderLayer.forward (self-attn + src-attn + FFN) as one fused Pallas kernel.

    x: (B, T, D) f32; memory: (B, S, D) f32; src_mask: (B, 1, S) key-padding mask.
    TODO(synk): the target mask is specialized to the standard causal (subsequent) mask and
    generated in-kernel; an arbitrary per-batch tgt_mask would need an extra (B,T,T) input.
    """
    B, T, D = x.shape
    S = memory.shape[1]
    assert D == D_MODEL

    D3 = 3 * D_MODEL
    sa, ca, ff = params["self_attn"], params["src_attn"], params["ffn"]

    # --- pack weights (bf16 for the MXU, halves weight DMA bytes) ---
    # attention slab (D, 8D): [self Wq|Wk|Wv (fused QKV) | self Wo | src Wq | src Wk|Wv | src Wo]
    w_attn = jnp.concatenate(
        [sa["wq"], sa["wk"], sa["wv"], sa["wo"],
         ca["wq"], ca["wk"], ca["wv"], ca["wo"]], axis=1).astype(jnp.bfloat16)
    # FFN slab (D+Dff, Dff): rows 0:D = W1, rows D: = W2 (zero-padded to Dff cols)
    w_ffn = jnp.concatenate(
        [ff["w1"], jnp.pad(ff["w2"], ((0, 0), (0, D_FF - D_MODEL)))],
        axis=0).astype(jnp.bfloat16)

    # --- pack every LN gain/bias and linear bias into one (16, Dff) f32 slab ---
    def _row(v):
        v = jnp.reshape(v, (-1,)).astype(jnp.float32)
        return jnp.pad(v, (0, D_FF - v.shape[0]))

    vecs = jnp.stack([
        _row(sa["ln_g"]), _row(sa["ln_b"]),          # 0,1
        _row(ca["ln_g"]), _row(ca["ln_b"]),          # 2,3
        _row(ff["ln_g"]), _row(ff["ln_b"]),          # 4,5
        _row(sa["bq"]), _row(sa["bk"]), _row(sa["bv"]), _row(sa["bo"]),   # 6..9
        _row(ca["bq"]), _row(ca["bk"]), _row(ca["bv"]), _row(ca["bo"]),   # 10..13
        _row(ff["b1"]), _row(ff["b2"]),              # 14,15
    ], axis=0)

    xf = x.reshape(B * T, D)                 # fold batch -> bigger matmul M dimension
    memf = memory.reshape(B * S, D)
    srcm = src_mask.reshape(B, S).astype(jnp.float32)   # compact key-padding mask

    def kernel(x_ref, mem_ref, srcm_ref, wa_ref, wf_ref, vec_ref, o_ref):
        xv = x_ref[...]          # (B*T, D) f32
        mem = mem_ref[...]       # (B*S, D) f32
        srcm_v = srcm_ref[...]   # (B, S)   f32
        wa = wa_ref[...]         # (D, 8D)  bf16
        wf = wf_ref[...]         # (D+Dff, Dff) bf16
        vec = vec_ref[...]       # (16, Dff) f32

        # unpack packed params
        ln0_g, ln0_b = vec[0, :D_MODEL], vec[1, :D_MODEL]
        ln1_g, ln1_b = vec[2, :D_MODEL], vec[3, :D_MODEL]
        ln2_g, ln2_b = vec[4, :D_MODEL], vec[5, :D_MODEL]
        bq0, bk0 = vec[6, :D_MODEL], vec[7, :D_MODEL]
        bv0, bo0 = vec[8, :D_MODEL], vec[9, :D_MODEL]
        bq1, bk1 = vec[10, :D_MODEL], vec[11, :D_MODEL]
        bv1, bo1 = vec[12, :D_MODEL], vec[13, :D_MODEL]
        b1 = vec[14, :]
        b2 = vec[15, :D_MODEL]

        w_qkv0 = wa[:, 0:D3]                                # (D, 3D) fused self QKV
        w_o0 = wa[:, D3:D3 + D_MODEL]
        w_q1 = wa[:, D3 + D_MODEL:D3 + 2 * D_MODEL]
        w_kv1 = wa[:, D3 + 2 * D_MODEL:D3 + 4 * D_MODEL]    # (D, 2D) fused src KV
        w_o1 = wa[:, D3 + 4 * D_MODEL:]
        w1 = wf[:D_MODEL, :]                                # (D, Dff)
        w2 = wf[D_MODEL:, :D_MODEL]                         # (Dff, D)

        # causal (subsequent) target mask generated in-kernel: keep = (q_pos >= k_pos)
        causal_keep = (lax.broadcasted_iota(jnp.int32, (T, T), 0) >=
                       lax.broadcasted_iota(jnp.int32, (T, T), 1))

        # ---- sublayer 0: masked self-attention (q = k = v = LN0(x)) ----
        xn = _layernorm(xv, ln0_g, ln0_b)
        qkv = jnp.dot(xn.astype(jnp.bfloat16), w_qkv0,
                      preferred_element_type=jnp.float32)    # (B*T, 3D) fused QKV
        q0 = qkv[:, :D_MODEL] + bq0
        k0 = qkv[:, D_MODEL:2 * D_MODEL] + bk0
        v0 = qkv[:, 2 * D_MODEL:] + bv0
        xv = xv + _mha(q0, k0, v0, [causal_keep] * B, w_o0, bo0, B, T, T)

        # ---- sublayer 1: encoder-decoder attention (keys/values = raw memory) ----
        xn = _layernorm(xv, ln1_g, ln1_b)
        q1 = jnp.dot(xn.astype(jnp.bfloat16), w_q1,
                     preferred_element_type=jnp.float32) + bq1
        kv = jnp.dot(mem.astype(jnp.bfloat16), w_kv1,
                     preferred_element_type=jnp.float32)     # (B*S, 2D) fused KV
        k1 = kv[:, :D_MODEL] + bk1
        v1 = kv[:, D_MODEL:] + bv1
        src_keep = [srcm_v[b:b + 1, :] != 0.0 for b in range(B)]   # (1,S) key-padding keep
        xv = xv + _mha(q1, k1, v1, src_keep, w_o1, bo1, B, T, S)

        # ---- sublayer 2: position-wise feed forward ----
        xn = _layernorm(xv, ln2_g, ln2_b)
        h = jnp.dot(xn.astype(jnp.bfloat16), w1, preferred_element_type=jnp.float32) + b1
        h = jnp.maximum(h, 0.0)
        # TODO(synk): dropout inside SublayerConnection / FFN is identity (eval mode / p=0).
        y = jnp.dot(h.astype(jnp.bfloat16), w2, preferred_element_type=jnp.float32) + b2
        o_ref[...] = xv + y

    out2d = pl.pallas_call(
        kernel,
        out_shape=jax.ShapeDtypeStruct((B * T, D), jnp.float32),
    )(xf, memf, srcm, w_attn, w_ffn, vecs)
    return out2d.reshape(B, T, D)


# ---------------------------------------------------------------------------
# deterministic parameter init (synthetic; matches module's shapes)
# ---------------------------------------------------------------------------
def _linear(key, din, dout):
    kw, kb = jax.random.split(key)
    w = jax.random.normal(kw, (din, dout), jnp.float32) / jnp.sqrt(float(din))
    b = jax.random.normal(kb, (1, dout), jnp.float32) * 0.01
    return w, b


def init_params(key):
    keys = jax.random.split(key, 10)
    params = {}
    for name, koff in (("self_attn", 0), ("src_attn", 4)):
        p = {"ln_g": jnp.ones((1, D_MODEL), jnp.float32),
             "ln_b": jnp.zeros((1, D_MODEL), jnp.float32)}
        p["wq"], p["bq"] = _linear(keys[koff + 0], D_MODEL, D_MODEL)
        p["wk"], p["bk"] = _linear(keys[koff + 1], D_MODEL, D_MODEL)
        p["wv"], p["bv"] = _linear(keys[koff + 2], D_MODEL, D_MODEL)
        p["wo"], p["bo"] = _linear(keys[koff + 3], D_MODEL, D_MODEL)
        params[name] = p
    fp = {"ln_g": jnp.ones((1, D_MODEL), jnp.float32),
          "ln_b": jnp.zeros((1, D_MODEL), jnp.float32)}
    fp["w1"], fp["b1"] = _linear(keys[8], D_MODEL, D_FF)
    fp["w2"], fp["b2"] = _linear(keys[9], D_FF, D_MODEL)
    params["ffn"] = fp
    return params


if __name__ == "__main__":
    B, T, S = 2, 8, 8
    key = jax.random.PRNGKey(0)
    kx, km, kp = jax.random.split(key, 3)

    x = jax.random.normal(kx, (B, T, D_MODEL), jnp.float32)
    memory = jax.random.normal(km, (B, S, D_MODEL), jnp.float32)

    # src key-padding mask (B, 1, S): batch 1 has its last two encoder positions padded.
    # (the causal target mask is generated inside the kernel)
    src_mask = jnp.ones((B, 1, S), jnp.float32).at[1, :, -2:].set(0.0)

    params = init_params(kp)

    out = decoder_layer(x, memory, src_mask, params)
    out = jax.block_until_ready(out)
    assert out.shape == (B, T, D_MODEL) and out.dtype == jnp.float32
    assert bool(jnp.all(jnp.isfinite(out)))
    print("KERNEL_OK")
</pallas_src>

<mosaic_0001>
module attributes {stable_mosaic.version = 11 : i64} {
  func.func @kernel(%arg0: memref<16x32xf32, #tpu.memory_space<vmem>>, %arg1: memref<16x32xf32, #tpu.memory_space<vmem>>, %arg2: memref<2x8xf32, #tpu.memory_space<vmem>>, %arg3: memref<32x256xbf16, #tpu.memory_space<vmem>>, %arg4: memref<96x64xbf16, #tpu.memory_space<vmem>>, %arg5: memref<16x64xf32, #tpu.memory_space<vmem>>, %arg6: memref<16x32xf32, #tpu.memory_space<vmem>>) attributes {dimension_semantics = [], scalar_prefetch = 0 : i64, scratch_operands = 0 : i64, tpu.core_type = #tpu.core_type<tc>} {
    %c0 = arith.constant 0 : index
    %c0_0 = arith.constant 0 : index
    %0 = vector.load %arg0[%c0, %c0_0] : memref<16x32xf32, #tpu.memory_space<vmem>>, vector<16x32xf32>
    %c0_1 = arith.constant 0 : index
    %c0_2 = arith.constant 0 : index
    %1 = vector.load %arg1[%c0_1, %c0_2] : memref<16x32xf32, #tpu.memory_space<vmem>>, vector<16x32xf32>
    %c0_3 = arith.constant 0 : index
    %c0_4 = arith.constant 0 : index
    %2 = vector.load %arg2[%c0_3, %c0_4] : memref<2x8xf32, #tpu.memory_space<vmem>>, vector<2x8xf32>
    %c0_5 = arith.constant 0 : index
    %c0_6 = arith.constant 0 : index
    %3 = vector.load %arg3[%c0_5, %c0_6] : memref<32x256xbf16, #tpu.memory_space<vmem>>, vector<32x256xbf16>
    %c0_7 = arith.constant 0 : index
    %c0_8 = arith.constant 0 : index
    %4 = vector.load %arg4[%c0_7, %c0_8] : memref<96x64xbf16, #tpu.memory_space<vmem>>, vector<96x64xbf16>
    %c0_9 = arith.constant 0 : index
    %c0_10 = arith.constant 0 : index
    %5 = vector.load %arg5[%c0_9, %c0_10] : memref<16x64xf32, #tpu.memory_space<vmem>>, vector<16x64xf32>
    %6 = vector.extract_strided_slice %5 {offsets = [0, 0], sizes = [1, 32], strides = [1, 1]} : vector<16x64xf32> to vector<1x32xf32>
    %7 = vector.shape_cast %6 : vector<1x32xf32> to vector<32xf32>
    %8 = vector.extract_strided_slice %5 {offsets = [1, 0], sizes = [1, 32], strides = [1, 1]} : vector<16x64xf32> to vector<1x32xf32>
    %9 = vector.shape_cast %8 : vector<1x32xf32> to vector<32xf32>
    %10 = vector.extract_strided_slice %5 {offsets = [2, 0], sizes = [1, 32], strides = [1, 1]} : vector<16x64xf32> to vector<1x32xf32>
    %11 = vector.shape_cast %10 : vector<1x32xf32> to vector<32xf32>
    %12 = vector.extract_strided_slice %5 {offsets = [3, 0], sizes = [1, 32], strides = [1, 1]} : vector<16x64xf32> to vector<1x32xf32>
    %13 = vector.shape_cast %12 : vector<1x32xf32> to vector<32xf32>
    %14 = vector.extract_strided_slice %5 {offsets = [4, 0], sizes = [1, 32], strides = [1, 1]} : vector<16x64xf32> to vector<1x32xf32>
    %15 = vector.shape_cast %14 : vector<1x32xf32> to vector<32xf32>
    %16 = vector.extract_strided_slice %5 {offsets = [5, 0], sizes = [1, 32], strides = [1, 1]} : vector<16x64xf32> to vector<1x32xf32>
    %17 = vector.shape_cast %16 : vector<1x32xf32> to vector<32xf32>
    %18 = vector.extract_strided_slice %5 {offsets = [6, 0], sizes = [1, 32], strides = [1, 1]} : vector<16x64xf32> to vector<1x32xf32>
    %19 = vector.shape_cast %18 : vector<1x32xf32> to vector<32xf32>
    %20 = vector.extract_strided_slice %5 {offsets = [7, 0], sizes = [1, 32], strides = [1, 1]} : vector<16x64xf32> to vector<1x32xf32>
    %21 = vector.shape_cast %20 : vector<1x32xf32> to vector<32xf32>
    %22 = vector.extract_strided_slice %5 {offsets = [8, 0], sizes = [1, 32], strides = [1, 1]} : vector<16x64xf32> to vector<1x32xf32>
    %23 = vector.shape_cast %22 : vector<1x32xf32> to vector<32xf32>
    %24 = vector.extract_strided_slice %5 {offsets = [9, 0], sizes = [1, 32], strides = [1, 1]} : vector<16x64xf32> to vector<1x32xf32>
    %25 = vector.shape_cast %24 : vector<1x32xf32> to vector<32xf32>
    %26 = vector.extract_strided_slice %5 {offsets = [10, 0], sizes = [1, 32], strides = [1, 1]} : vector<16x64xf32> to vector<1x32xf32>
    %27 = vector.shape_cast %26 : vector<1x32xf32> to vector<32xf32>
    %28 = vector.extract_strided_slice %5 {offsets = [11, 0], sizes = [1, 32], strides = [1, 1]} : vector<16x64xf32> to vector<1x32xf32>
    %29 = vector.shape_cast %28 : vector<1x32xf32> to vector<32xf32>
    %30 = vector.extract_strided_slice %5 {offsets = [12, 0], sizes = [1, 32], strides = [1, 1]} : vector<16x64xf32> to vector<1x32xf32>
    %31 = vector.shape_cast %30 : vector<1x32xf32> to vector<32xf32>
    %32 = vector.extract_strided_slice %5 {offsets = [13, 0], sizes = [1, 32], strides = [1, 1]} : vector<16x64xf32> to vector<1x32xf32>
    %33 = vector.shape_cast %32 : vector<1x32xf32> to vector<32xf32>
    %34 = vector.extract_strided_slice %5 {offsets = [14, 0], sizes = [1, 64], strides = [1, 1]} : vector<16x64xf32> to vector<1x64xf32>
    %35 = vector.shape_cast %34 : vector<1x64xf32> to vector<64xf32>
    %36 = vector.extract_strided_slice %5 {offsets = [15, 0], sizes = [1, 32], strides = [1, 1]} : vector<16x64xf32> to vector<1x32xf32>
    %37 = vector.shape_cast %36 : vector<1x32xf32> to vector<32xf32>
    %38 = vector.extract_strided_slice %3 {offsets = [0, 0], sizes = [32, 96], strides = [1, 1]} : vector<32x256xbf16> to vector<32x96xbf16>
    %39 = vector.extract_strided_slice %3 {offsets = [0, 96], sizes = [32, 32], strides = [1, 1]} : vector<32x256xbf16> to vector<32x32xbf16>
    %40 = vector.extract_strided_slice %3 {offsets = [0, 128], sizes = [32, 32], strides = [1, 1]} : vector<32x256xbf16> to vector<32x32xbf16>
    %41 = vector.extract_strided_slice %3 {offsets = [0, 160], sizes = [32, 64], strides = [1, 1]} : vector<32x256xbf16> to vector<32x64xbf16>
    %42 = vector.extract_strided_slice %3 {offsets = [0, 224], sizes = [32, 32], strides = [1, 1]} : vector<32x256xbf16> to vector<32x32xbf16>
    %43 = vector.extract_strided_slice %4 {offsets = [0, 0], sizes = [32, 64], strides = [1, 1]} : vector<96x64xbf16> to vector<32x64xbf16>
    %44 = vector.extract_strided_slice %4 {offsets = [32, 0], sizes = [64, 32], strides = [1, 1]} : vector<96x64xbf16> to vector<64x32xbf16>
    %45 = tpu.iota {dimensions = array<i32: 0>} : vector<8x8xi32>
    %46 = tpu.iota {dimensions = array<i32: 1>} : vector<8x8xi32>
    %47 = arith.cmpi sge, %45, %46 : vector<8x8xi32>
    %cst = arith.constant dense<0.000000e+00> : vector<16xf32>
    %48 = vector.multi_reduction <add>, %0, %cst [1] : vector<16x32xf32> to vector<16xf32>
    %49 = vector.shape_cast %48 : vector<16xf32> to vector<16x1xf32>
    %cst_11 = arith.constant 3.200000e+01 : f32
    %50 = vector.broadcast %cst_11 : f32 to vector<16x1xf32>
    %51 = arith.divf %49, %50 : vector<16x1xf32>
    %52 = vector.broadcast %51 : vector<16x1xf32> to vector<16x32xf32>
    %53 = arith.subf %0, %52 : vector<16x32xf32>
    %54 = arith.mulf %53, %53 : vector<16x32xf32>
    %cst_12 = arith.constant dense<0.000000e+00> : vector<16xf32>
    %55 = vector.multi_reduction <add>, %54, %cst_12 [1] : vector<16x32xf32> to vector<16xf32>
    %56 = vector.shape_cast %55 : vector<16xf32> to vector<16x1xf32>
    %cst_13 = arith.constant 0.0322580636 : f32
    %57 = vector.broadcast %cst_13 : f32 to vector<16x1xf32>
    %58 = arith.mulf %56, %57 : vector<16x1xf32>
    %59 = math.sqrt %58 : vector<16x1xf32>
    %cst_14 = arith.constant 9.99999997E-7 : f32
    %60 = vector.broadcast %cst_14 : f32 to vector<16x1xf32>
    %61 = arith.addf %59, %60 : vector<16x1xf32>
    %62 = tpu.reciprocal %61 {approx = true} : vector<16x1xf32> -> vector<16x1xf32>
    %63 = vector.broadcast %62 : vector<16x1xf32> to vector<16x32xf32>
    %64 = arith.mulf %53, %63 : vector<16x32xf32>
    %65 = vector.shape_cast %7 : vector<32xf32> to vector<1x32xf32>
    %66 = vector.broadcast %65 : vector<1x32xf32> to vector<16x32xf32>
    %67 = arith.mulf %66, %64 : vector<16x32xf32>
    %68 = vector.shape_cast %9 : vector<32xf32> to vector<1x32xf32>
    %69 = vector.broadcast %68 : vector<1x32xf32> to vector<16x32xf32>
    %70 = arith.addf %67, %69 : vector<16x32xf32>
    %71 = arith.truncf %70 : vector<16x32xf32> to vector<16x32xbf16>
    %cst_15 = arith.constant dense<0.000000e+00> : vector<16x96xf32>
    %72 = tpu.matmul %71, %38, %cst_15 {dimension_numbers = #tpu.dot_dimension_numbers<[1], [0], [0], [1], [0, 0, 1, 1], [], []>} : vector<16x32xbf16>, vector<32x96xbf16>, vector<16x96xf32> -> vector<16x96xf32>
    %73 = vector.extract_strided_slice %72 {offsets = [0, 0], sizes = [16, 32], strides = [1, 1]} : vector<16x96xf32> to vector<16x32xf32>
    %74 = vector.shape_cast %19 : vector<32xf32> to vector<1x32xf32>
    %75 = vector.broadcast %74 : vector<1x32xf32> to vector<16x32xf32>
    %76 = arith.addf %73, %75 : vector<16x32xf32>
    %77 = vector.extract_strided_slice %72 {offsets = [0, 32], sizes = [16, 32], strides = [1, 1]} : vector<16x96xf32> to vector<16x32xf32>
    %78 = vector.shape_cast %21 : vector<32xf32> to vector<1x32xf32>
    %79 = vector.broadcast %78 : vector<1x32xf32> to vector<16x32xf32>
    %80 = arith.addf %77, %79 : vector<16x32xf32>
    %81 = vector.extract_strided_slice %72 {offsets = [0, 64], sizes = [16, 32], strides = [1, 1]} : vector<16x96xf32> to vector<16x32xf32>
    %82 = vector.shape_cast %23 : vector<32xf32> to vector<1x32xf32>
    %83 = vector.broadcast %82 : vector<1x32xf32> to vector<16x32xf32>
    %84 = arith.addf %81, %83 : vector<16x32xf32>
    %85 = vector.extract_strided_slice %76 {offsets = [0, 0], sizes = [16, 8], strides = [1, 1]} : vector<16x32xf32> to vector<16x8xf32>
    %86 = vector.extract_strided_slice %76 {offsets = [0, 8], sizes = [16, 8], strides = [1, 1]} : vector<16x32xf32> to vector<16x8xf32>
    %87 = vector.extract_strided_slice %76 {offsets = [0, 16], sizes = [16, 8], strides = [1, 1]} : vector<16x32xf32> to vector<16x8xf32>
    %88 = vector.extract_strided_slice %76 {offsets = [0, 24], sizes = [16, 8], strides = [1, 1]} : vector<16x32xf32> to vector<16x8xf32>
    %89 = vector.shape_cast %85 : vector<16x8xf32> to vector<1x16x8xf32>
    %90 = vector.shape_cast %86 : vector<16x8xf32> to vector<1x16x8xf32>
    %91 = vector.shape_cast %87 : vector<16x8xf32> to vector<1x16x8xf32>
    %92 = vector.shape_cast %88 : vector<16x8xf32> to vector<1x16x8xf32>
    %93 = tpu.concatenate %89, %90, %91, %92 in 0 : vector<1x16x8xf32>, vector<1x16x8xf32>, vector<1x16x8xf32>, vector<1x16x8xf32> -> vector<4x16x8xf32>
    %94 = arith.truncf %93 : vector<4x16x8xf32> to vector<4x16x8xbf16>
    %95 = vector.extract_strided_slice %80 {offsets = [0, 0], sizes = [16, 8], strides = [1, 1]} : vector<16x32xf32> to vector<16x8xf32>
    %96 = vector.extract_strided_slice %80 {offsets = [0, 8], sizes = [16, 8], strides = [1, 1]} : vector<16x32xf32> to vector<16x8xf32>
    %97 = vector.extract_strided_slice %80 {offsets = [0, 16], sizes = [16, 8], strides = [1, 1]} : vector<16x32xf32> to vector<16x8xf32>
    %98 = vector.extract_strided_slice %80 {offsets = [0, 24], sizes = [16, 8], strides = [1, 1]} : vector<16x32xf32> to vector<16x8xf32>
    %99 = vector.shape_cast %95 : vector<16x8xf32> to vector<1x16x8xf32>
    %100 = vector.shape_cast %96 : vector<16x8xf32> to vector<1x16x8xf32>
    %101 = vector.shape_cast %97 : vector<16x8xf32> to vector<1x16x8xf32>
    %102 = vector.shape_cast %98 : vector<16x8xf32> to vector<1x16x8xf32>
    %103 = tpu.concatenate %99, %100, %101, %102 in 0 : vector<1x16x8xf32>, vector<1x16x8xf32>, vector<1x16x8xf32>, vector<1x16x8xf32> -> vector<4x16x8xf32>
    %104 = arith.truncf %103 : vector<4x16x8xf32> to vector<4x16x8xbf16>
    %105 = vector.extract_strided_slice %84 {offsets = [0, 0], sizes = [16, 8], strides = [1, 1]} : vector<16x32xf32> to vector<16x8xf32>
    %106 = vector.extract_strided_slice %84 {offsets = [0, 8], sizes = [16, 8], strides = [1, 1]} : vector<16x32xf32> to vector<16x8xf32>
    %107 = vector.extract_strided_slice %84 {offsets = [0, 16], sizes = [16, 8], strides = [1, 1]} : vector<16x32xf32> to vector<16x8xf32>
    %108 = vector.extract_strided_slice %84 {offsets = [0, 24], sizes = [16, 8], strides = [1, 1]} : vector<16x32xf32> to vector<16x8xf32>
    %109 = vector.shape_cast %105 : vector<16x8xf32> to vector<1x16x8xf32>
    %110 = vector.shape_cast %106 : vector<16x8xf32> to vector<1x16x8xf32>
    %111 = vector.shape_cast %107 : vector<16x8xf32> to vector<1x16x8xf32>
    %112 = vector.shape_cast %108 : vector<16x8xf32> to vector<1x16x8xf32>
    %113 = tpu.concatenate %109, %110, %111, %112 in 0 : vector<1x16x8xf32>, vector<1x16x8xf32>, vector<1x16x8xf32>, vector<1x16x8xf32> -> vector<4x16x8xf32>
    %114 = arith.truncf %113 : vector<4x16x8xf32> to vector<4x16x8xbf16>
    %115 = vector.extract_strided_slice %94 {offsets = [0, 0, 0], sizes = [4, 8, 8], strides = [1, 1, 1]} : vector<4x16x8xbf16> to vector<4x8x8xbf16>
    %116 = vector.extract_strided_slice %104 {offsets = [0, 0, 0], sizes = [4, 8, 8], strides = [1, 1, 1]} : vector<4x16x8xbf16> to vector<4x8x8xbf16>
    %117 = vector.extract_strided_slice %114 {offsets = [0, 0, 0], sizes = [4, 8, 8], strides = [1, 1, 1]} : vector<4x16x8xbf16> to vector<4x8x8xbf16>
    "tpu.trace_start"() <{level = 10 : i32, message = "hqd,hkd->hqk"}> : () -> ()
    %cst_16 = arith.constant dense<0.000000e+00> : vector<4x8x8xf32>
    %118 = tpu.matmul %115, %116, %cst_16 {dimension_numbers = #tpu.dot_dimension_numbers<[2], [2], [1], [1], [0, 0, 0, 1, 1, 1], [0], [0]>} : vector<4x8x8xbf16>, vector<4x8x8xbf16>, vector<4x8x8xf32> -> vector<4x8x8xf32>
    "tpu.trace_stop"() : () -> ()
    %cst_17 = arith.constant 0.353553385 : f32
    %119 = vector.broadcast %cst_17 : f32 to vector<4x8x8xf32>
    %120 = arith.mulf %118, %119 : vector<4x8x8xf32>
    %cst_18 = arith.constant -1.000000e+09 : f32
    %121 = vector.shape_cast %47 : vector<8x8xi1> to vector<1x8x8xi1>
    %122 = vector.broadcast %121 : vector<1x8x8xi1> to vector<4x8x8xi1>
    %123 = vector.broadcast %cst_18 : f32 to vector<4x8x8xf32>
    %124 = arith.select %122, %120, %123 : vector<4x8x8xi1>, vector<4x8x8xf32>
    %cst_19 = arith.constant dense<0xFF800000> : vector<4x8xf32>
    %125 = vector.multi_reduction <maximumf>, %124, %cst_19 [2] : vector<4x8x8xf32> to vector<4x8xf32>
    %126 = vector.shape_cast %125 : vector<4x8xf32> to vector<4x8x1xf32>
    %127 = vector.broadcast %126 : vector<4x8x1xf32> to vector<4x8x8xf32>
    %128 = arith.subf %124, %127 : vector<4x8x8xf32>
    %129 = math.exp %128 : vector<4x8x8xf32>
    %cst_20 = arith.constant dense<0.000000e+00> : vector<4x8xf32>
    %130 = vector.multi_reduction <add>, %129, %cst_20 [2] : vector<4x8x8xf32> to vector<4x8xf32>
    %131 = vector.shape_cast %130 : vector<4x8xf32> to vector<4x8x1xf32>
    %132 = tpu.reciprocal %131 {approx = true} : vector<4x8x1xf32> -> vector<4x8x1xf32>
    %133 = vector.broadcast %132 : vector<4x8x1xf32> to vector<4x8x8xf32>
    %134 = arith.mulf %129, %133 : vector<4x8x8xf32>
    %135 = arith.truncf %134 : vector<4x8x8xf32> to vector<4x8x8xbf16>
    "tpu.trace_start"() <{level = 10 : i32, message = "hqk,hkd->hqd"}> : () -> ()
    %cst_21 = arith.constant dense<0.000000e+00> : vector<4x8x8xf32>
    %136 = tpu.matmul %135, %117, %cst_21 {dimension_numbers = #tpu.dot_dimension_numbers<[2], [1], [1], [2], [0, 0, 0, 1, 1, 2], [0], [0]>} : vector<4x8x8xbf16>, vector<4x8x8xbf16>, vector<4x8x8xf32> -> vector<4x8x8xf32>
    "tpu.trace_stop"() : () -> ()
    %137 = vector.extract_strided_slice %136 {offsets = [0, 0, 0], sizes = [1, 8, 8], strides = [1, 1, 1]} : vector<4x8x8xf32> to vector<1x8x8xf32>
    %138 = vector.shape_cast %137 : vector<1x8x8xf32> to vector<8x8xf32>
    %139 = arith.truncf %138 : vector<8x8xf32> to vector<8x8xbf16>
    %140 = vector.extract_strided_slice %39 {offsets = [0, 0], sizes = [8, 32], strides = [1, 1]} : vector<32x32xbf16> to vector<8x32xbf16>
    %cst_22 = arith.constant dense<0.000000e+00> : vector<8x32xf32>
    %141 = tpu.matmul %139, %140, %cst_22 {dimension_numbers = #tpu.dot_dimension_numbers<[1], [0], [0], [1], [0, 0, 1, 1], [], []>} : vector<8x8xbf16>, vector<8x32xbf16>, vector<8x32xf32> -> vector<8x32xf32>
    %142 = vector.shape_cast %25 : vector<32xf32> to vector<1x32xf32>
    %143 = vector.broadcast %142 : vector<1x32xf32> to vector<8x32xf32>
    %144 = arith.addf %143, %141 : vector<8x32xf32>
    %145 = vector.extract_strided_slice %136 {offsets = [1, 0, 0], sizes = [1, 8, 8], strides = [1, 1, 1]} : vector<4x8x8xf32> to vector<1x8x8xf32>
    %146 = vector.shape_cast %145 : vector<1x8x8xf32> to vector<8x8xf32>
    %147 = arith.truncf %146 : vector<8x8xf32> to vector<8x8xbf16>
    %148 = vector.extract_strided_slice %39 {offsets = [8, 0], sizes = [8, 32], strides = [1, 1]} : vector<32x32xbf16> to vector<8x32xbf16>
    %cst_23 = arith.constant dense<0.000000e+00> : vector<8x32xf32>
    %149 = tpu.matmul %147, %148, %cst_23 {dimension_numbers = #tpu.dot_dimension_numbers<[1], [0], [0], [1], [0, 0, 1, 1], [], []>} : vector<8x8xbf16>, vector<8x32xbf16>, vector<8x32xf32> -> vector<8x32xf32>
    %150 = arith.addf %144, %149 : vector<8x32xf32>
    %151 = vector.extract_strided_slice %136 {offsets = [2, 0, 0], sizes = [1, 8, 8], strides = [1, 1, 1]} : vector<4x8x8xf32> to vector<1x8x8xf32>
    %152 = vector.shape_cast %151 : vector<1x8x8xf32> to vector<8x8xf32>
    %153 = arith.truncf %152 : vector<8x8xf32> to vector<8x8xbf16>
    %154 = vector.extract_strided_slice %39 {offsets = [16, 0], sizes = [8, 32], strides = [1, 1]} : vector<32x32xbf16> to vector<8x32xbf16>
    %cst_24 = arith.constant dense<0.000000e+00> : vector<8x32xf32>
    %155 = tpu.matmul %153, %154, %cst_24 {dimension_numbers = #tpu.dot_dimension_numbers<[1], [0], [0], [1], [0, 0, 1, 1], [], []>} : vector<8x8xbf16>, vector<8x32xbf16>, vector<8x32xf32> -> vector<8x32xf32>
    %156 = arith.addf %150, %155 : vector<8x32xf32>
    %157 = vector.extract_strided_slice %136 {offsets = [3, 0, 0], sizes = [1, 8, 8], strides = [1, 1, 1]} : vector<4x8x8xf32> to vector<1x8x8xf32>
    %158 = vector.shape_cast %157 : vector<1x8x8xf32> to vector<8x8xf32>
    %159 = arith.truncf %158 : vector<8x8xf32> to vector<8x8xbf16>
    %160 = vector.extract_strided_slice %39 {offsets = [24, 0], sizes = [8, 32], strides = [1, 1]} : vector<32x32xbf16> to vector<8x32xbf16>
    %cst_25 = arith.constant dense<0.000000e+00> : vector<8x32xf32>
    %161 = tpu.matmul %159, %160, %cst_25 {dimension_numbers = #tpu.dot_dimension_numbers<[1], [0], [0], [1], [0, 0, 1, 1], [], []>} : vector<8x8xbf16>, vector<8x32xbf16>, vector<8x32xf32> -> vector<8x32xf32>
    %162 = arith.addf %156, %161 : vector<8x32xf32>
    %163 = vector.extract_strided_slice %94 {offsets = [0, 8, 0], sizes = [4, 8, 8], strides = [1, 1, 1]} : vector<4x16x8xbf16> to vector<4x8x8xbf16>
    %164 = vector.extract_strided_slice %104 {offsets = [0, 8, 0], sizes = [4, 8, 8], strides = [1, 1, 1]} : vector<4x16x8xbf16> to vector<4x8x8xbf16>
    %165 = vector.extract_strided_slice %114 {offsets = [0, 8, 0], sizes = [4, 8, 8], strides = [1, 1, 1]} : vector<4x16x8xbf16> to vector<4x8x8xbf16>
    "tpu.trace_start"() <{level = 10 : i32, message = "hqd,hkd->hqk"}> : () -> ()
    %cst_26 = arith.constant dense<0.000000e+00> : vector<4x8x8xf32>
    %166 = tpu.matmul %163, %164, %cst_26 {dimension_numbers = #tpu.dot_dimension_numbers<[2], [2], [1], [1], [0, 0, 0, 1, 1, 1], [0], [0]>} : vector<4x8x8xbf16>, vector<4x8x8xbf16>, vector<4x8x8xf32> -> vector<4x8x8xf32>
    "tpu.trace_stop"() : () -> ()
    %cst_27 = arith.constant 0.353553385 : f32
    %167 = vector.broadcast %cst_27 : f32 to vector<4x8x8xf32>
    %168 = arith.mulf %166, %167 : vector<4x8x8xf32>
    %cst_28 = arith.constant -1.000000e+09 : f32
    %169 = vector.shape_cast %47 : vector<8x8xi1> to vector<1x8x8xi1>
    %170 = vector.broadcast %169 : vector<1x8x8xi1> to vector<4x8x8xi1>
    %171 = vector.broadcast %cst_28 : f32 to vector<4x8x8xf32>
    %172 = arith.select %170, %168, %171 : vector<4x8x8xi1>, vector<4x8x8xf32>
    %cst_29 = arith.constant dense<0xFF800000> : vector<4x8xf32>
    %173 = vector.multi_reduction <maximumf>, %172, %cst_29 [2] : vector<4x8x8xf32> to vector<4x8xf32>
    %174 = vector.shape_cast %173 : vector<4x8xf32> to vector<4x8x1xf32>
    %175 = vector.broadcast %174 : vector<4x8x1xf32> to vector<4x8x8xf32>
    %176 = arith.subf %172, %175 : vector<4x8x8xf32>
    %177 = math.exp %176 : vector<4x8x8xf32>
    %cst_30 = arith.constant dense<0.000000e+00> : vector<4x8xf32>
    %178 = vector.multi_reduction <add>, %177, %cst_30 [2] : vector<4x8x8xf32> to vector<4x8xf32>
    %179 = vector.shape_cast %178 : vector<4x8xf32> to vector<4x8x1xf32>
    %180 = tpu.reciprocal %179 {approx = true} : vector<4x8x1xf32> -> vector<4x8x1xf32>
    %181 = vector.broadcast %180 : vector<4x8x1xf32> to vector<4x8x8xf32>
    %182 = arith.mulf %177, %181 : vector<4x8x8xf32>
    %183 = arith.truncf %182 : vector<4x8x8xf32> to vector<4x8x8xbf16>
    "tpu.trace_start"() <{level = 10 : i32, message = "hqk,hkd->hqd"}> : () -> ()
    %cst_31 = arith.constant dense<0.000000e+00> : vector<4x8x8xf32>
    %184 = tpu.matmul %183, %165, %cst_31 {dimension_numbers = #tpu.dot_dimension_numbers<[2], [1], [1], [2], [0, 0, 0, 1, 1, 2], [0], [0]>} : vector<4x8x8xbf16>, vector<4x8x8xbf16>, vector<4x8x8xf32> -> vector<4x8x8xf32>
    "tpu.trace_stop"() : () -> ()
    %185 = vector.extract_strided_slice %184 {offsets = [0, 0, 0], sizes = [1, 8, 8], strides = [1, 1, 1]} : vector<4x8x8xf32> to vector<1x8x8xf32>
    %186 = vector.shape_cast %185 : vector<1x8x8xf32> to vector<8x8xf32>
    %187 = arith.truncf %186 : vector<8x8xf32> to vector<8x8xbf16>
    %188 = vector.extract_strided_slice %39 {offsets = [0, 0], sizes = [8, 32], strides = [1, 1]} : vector<32x32xbf16> to vector<8x32xbf16>
    %cst_32 = arith.constant dense<0.000000e+00> : vector<8x32xf32>
    %189 = tpu.matmul %187, %188, %cst_32 {dimension_numbers = #tpu.dot_dimension_numbers<[1], [0], [0], [1], [0, 0, 1, 1], [], []>} : vector<8x8xbf16>, vector<8x32xbf16>, vector<8x32xf32> -> vector<8x32xf32>
    %190 = vector.shape_cast %25 : vector<32xf32> to vector<1x32xf32>
    %191 = vector.broadcast %190 : vector<1x32xf32> to vector<8x32xf32>
    %192 = arith.addf %191, %189 : vector<8x32xf32>
    %193 = vector.extract_strided_slice %184 {offsets = [1, 0, 0], sizes = [1, 8, 8], strides = [1, 1, 1]} : vector<4x8x8xf32> to vector<1x8x8xf32>
    %194 = vector.shape_cast %193 : vector<1x8x8xf32> to vector<8x8xf32>
    %195 = arith.truncf %194 : vector<8x8xf32> to vector<8x8xbf16>
    %196 = vector.extract_strided_slice %39 {offsets = [8, 0], sizes = [8, 32], strides = [1, 1]} : vector<32x32xbf16> to vector<8x32xbf16>
    %cst_33 = arith.constant dense<0.000000e+00> : vector<8x32xf32>
    %197 = tpu.matmul %195, %196, %cst_33 {dimension_numbers = #tpu.dot_dimension_numbers<[1], [0], [0], [1], [0, 0, 1, 1], [], []>} : vector<8x8xbf16>, vector<8x32xbf16>, vector<8x32xf32> -> vector<8x32xf32>
    %198 = arith.addf %192, %197 : vector<8x32xf32>
    %199 = vector.extract_strided_slice %184 {offsets = [2, 0, 0], sizes = [1, 8, 8], strides = [1, 1, 1]} : vector<4x8x8xf32> to vector<1x8x8xf32>
    %200 = vector.shape_cast %199 : vector<1x8x8xf32> to vector<8x8xf32>
    %201 = arith.truncf %200 : vector<8x8xf32> to vector<8x8xbf16>
    %202 = vector.extract_strided_slice %39 {offsets = [16, 0], sizes = [8, 32], strides = [1, 1]} : vector<32x32xbf16> to vector<8x32xbf16>
    %cst_34 = arith.constant dense<0.000000e+00> : vector<8x32xf32>
    %203 = tpu.matmul %201, %202, %cst_34 {dimension_numbers = #tpu.dot_dimension_numbers<[1], [0], [0], [1], [0, 0, 1, 1], [], []>} : vector<8x8xbf16>, vector<8x32xbf16>, vector<8x32xf32> -> vector<8x32xf32>
    %204 = arith.addf %198, %203 : vector<8x32xf32>
    %205 = vector.extract_strided_slice %184 {offsets = [3, 0, 0], sizes = [1, 8, 8], strides = [1, 1, 1]} : vector<4x8x8xf32> to vector<1x8x8xf32>
    %206 = vector.shape_cast %205 : vector<1x8x8xf32> to vector<8x8xf32>
    %207 = arith.truncf %206 : vector<8x8xf32> to vector<8x8xbf16>
    %208 = vector.extract_strided_slice %39 {offsets = [24, 0], sizes = [8, 32], strides = [1, 1]} : vector<32x32xbf16> to vector<8x32xbf16>
    %cst_35 = arith.constant dense<0.000000e+00> : vector<8x32xf32>
    %209 = tpu.matmul %207, %208, %cst_35 {dimension_numbers = #tpu.dot_dimension_numbers<[1], [0], [0], [1], [0, 0, 1, 1], [], []>} : vector<8x8xbf16>, vector<8x32xbf16>, vector<8x32xf32> -> vector<8x32xf32>
    %210 = arith.addf %204, %209 : vector<8x32xf32>
    %211 = tpu.concatenate %162, %210 in 0 : vector<8x32xf32>, vector<8x32xf32> -> vector<16x32xf32>
    %212 = arith.addf %0, %211 : vector<16x32xf32>
    %cst_36 = arith.constant dense<0.000000e+00> : vector<16xf32>
    %213 = vector.multi_reduction <add>, %212, %cst_36 [1] : vector<16x32xf32> to vector<16xf32>
    %214 = vector.shape_cast %213 : vector<16xf32> to vector<16x1xf32>
    %cst_37 = arith.constant 3.200000e+01 : f32
    %215 = vector.broadcast %cst_37 : f32 to vector<16x1xf32>
    %216 = arith.divf %214, %215 : vector<16x1xf32>
    %217 = vector.broadcast %216 : vector<16x1xf32> to vector<16x32xf32>
    %218 = arith.subf %212, %217 : vector<16x32xf32>
    %219 = arith.mulf %218, %218 : vector<16x32xf32>
    %cst_38 = arith.constant dense<0.000000e+00> : vector<16xf32>
    %220 = vector.multi_reduction <add>, %219, %cst_38 [1] : vector<16x32xf32> to vector<16xf32>
    %221 = vector.shape_cast %220 : vector<16xf32> to vector<16x1xf32>
    %cst_39 = arith.constant 0.0322580636 : f32
    %222 = vector.broadcast %cst_39 : f32 to vector<16x1xf32>
    %223 = arith.mulf %221, %222 : vector<16x1xf32>
    %224 = math.sqrt %223 : vector<16x1xf32>
    %cst_40 = arith.constant 9.99999997E-7 : f32
    %225 = vector.broadcast %cst_40 : f32 to vector<16x1xf32>
    %226 = arith.addf %224, %225 : vector<16x1xf32>
    %227 = tpu.reciprocal %226 {approx = true} : vector<16x1xf32> -> vector<16x1xf32>
    %228 = vector.broadcast %227 : vector<16x1xf32> to vector<16x32xf32>
    %229 = arith.mulf %218, %228 : vector<16x32xf32>
    %230 = vector.shape_cast %11 : vector<32xf32> to vector<1x32xf32>
    %231 = vector.broadcast %230 : vector<1x32xf32> to vector<16x32xf32>
    %232 = arith.mulf %231, %229 : vector<16x32xf32>
    %233 = vector.shape_cast %13 : vector<32xf32> to vector<1x32xf32>
    %234 = vector.broadcast %233 : vector<1x32xf32> to vector<16x32xf32>
    %235 = arith.addf %232, %234 : vector<16x32xf32>
    %236 = arith.truncf %235 : vector<16x32xf32> to vector<16x32xbf16>
    %cst_41 = arith.constant dense<0.000000e+00> : vector<16x32xf32>
    %237 = tpu.matmul %236, %40, %cst_41 {dimension_numbers = #tpu.dot_dimension_numbers<[1], [0], [0], [1], [0, 0, 1, 1], [], []>} : vector<16x32xbf16>, vector<32x32xbf16>, vector<16x32xf32> -> vector<16x32xf32>
    %238 = vector.shape_cast %27 : vector<32xf32> to vector<1x32xf32>
    %239 = vector.broadcast %238 : vector<1x32xf32> to vector<16x32xf32>
    %240 = arith.addf %237, %239 : vector<16x32xf32>
    %241 = arith.truncf %1 : vector<16x32xf32> to vector<16x32xbf16>
    %cst_42 = arith.constant dense<0.000000e+00> : vector<16x64xf32>
    %242 = tpu.matmul %241, %41, %cst_42 {dimension_numbers = #tpu.dot_dimension_numbers<[1], [0], [0], [1], [0, 0, 1, 1], [], []>} : vector<16x32xbf16>, vector<32x64xbf16>, vector<16x64xf32> -> vector<16x64xf32>
    %243 = vector.extract_strided_slice %242 {offsets = [0, 0], sizes = [16, 32], strides = [1, 1]} : vector<16x64xf32> to vector<16x32xf32>
    %244 = vector.shape_cast %29 : vector<32xf32> to vector<1x32xf32>
    %245 = vector.broadcast %244 : vector<1x32xf32> to vector<16x32xf32>
    %246 = arith.addf %243, %245 : vector<16x32xf32>
    %247 = vector.extract_strided_slice %242 {offsets = [0, 32], sizes = [16, 32], strides = [1, 1]} : vector<16x64xf32> to vector<16x32xf32>
    %248 = vector.shape_cast %31 : vector<32xf32> to vector<1x32xf32>
    %249 = vector.broadcast %248 : vector<1x32xf32> to vector<16x32xf32>
    %250 = arith.addf %247, %249 : vector<16x32xf32>
    %251 = vector.extract_strided_slice %2 {offsets = [0, 0], sizes = [1, 8], strides = [1, 1]} : vector<2x8xf32> to vector<1x8xf32>
    %cst_43 = arith.constant 0.000000e+00 : f32
    %252 = vector.broadcast %cst_43 : f32 to vector<1x8xf32>
    %253 = arith.cmpf one, %251, %252 : vector<1x8xf32>
    %254 = vector.extract_strided_slice %2 {offsets = [1, 0], sizes = [1, 8], strides = [1, 1]} : vector<2x8xf32> to vector<1x8xf32>
    %cst_44 = arith.constant 0.000000e+00 : f32
    %255 = vector.broadcast %cst_44 : f32 to vector<1x8xf32>
    %256 = arith.cmpf one, %254, %255 : vector<1x8xf32>
    %257 = vector.extract_strided_slice %240 {offsets = [0, 0], sizes = [16, 8], strides = [1, 1]} : vector<16x32xf32> to vector<16x8xf32>
    %258 = vector.extract_strided_slice %240 {offsets = [0, 8], sizes = [16, 8], strides = [1, 1]} : vector<16x32xf32> to vector<16x8xf32>
    %259 = vector.extract_strided_slice %240 {offsets = [0, 16], sizes = [16, 8], strides = [1, 1]} : vector<16x32xf32> to vector<16x8xf32>
    %260 = vector.extract_strided_slice %240 {offsets = [0, 24], sizes = [16, 8], strides = [1, 1]} : vector<16x32xf32> to vector<16x8xf32>
    %261 = vector.shape_cast %257 : vector<16x8xf32> to vector<1x16x8xf32>
    %262 = vector.shape_cast %258 : vector<16x8xf32> to vector<1x16x8xf32>
    %263 = vector.shape_cast %259 : vector<16x8xf32> to vector<1x16x8xf32>
    %264 = vector.shape_cast %260 : vector<16x8xf32> to vector<1x16x8xf32>
    %265 = tpu.concatenate %261, %262, %263, %264 in 0 : vector<1x16x8xf32>, vector<1x16x8xf32>, vector<1x16x8xf32>, vector<1x16x8xf32> -> vector<4x16x8xf32>
    %266 = arith.truncf %265 : vector<4x16x8xf32> to vector<4x16x8xbf16>
    %267 = vector.extract_strided_slice %246 {offsets = [0, 0], sizes = [16, 8], strides = [1, 1]} : vector<16x32xf32> to vector<16x8xf32>
    %268 = vector.extract_strided_slice %246 {offsets = [0, 8], sizes = [16, 8], strides = [1, 1]} : vector<16x32xf32> to vector<16x8xf32>
    %269 = vector.extract_strided_slice %246 {offsets = [0, 16], sizes = [16, 8], strides = [1, 1]} : vector<16x32xf32> to vector<16x8xf32>
    %270 = vector.extract_strided_slice %246 {offsets = [0, 24], sizes = [16, 8], strides = [1, 1]} : vector<16x32xf32> to vector<16x8xf32>
    %271 = vector.shape_cast %267 : vector<16x8xf32> to vector<1x16x8xf32>
    %272 = vector.shape_cast %268 : vector<16x8xf32> to vector<1x16x8xf32>
    %273 = vector.shape_cast %269 : vector<16x8xf32> to vector<1x16x8xf32>
    %274 = vector.shape_cast %270 : vector<16x8xf32> to vector<1x16x8xf32>
    %275 = tpu.concatenate %271, %272, %273, %274 in 0 : vector<1x16x8xf32>, vector<1x16x8xf32>, vector<1x16x8xf32>, vector<1x16x8xf32> -> vector<4x16x8xf32>
    %276 = arith.truncf %275 : vector<4x16x8xf32> to vector<4x16x8xbf16>
    %277 = vector.extract_strided_slice %250 {offsets = [0, 0], sizes = [16, 8], strides = [1, 1]} : vector<16x32xf32> to vector<16x8xf32>
    %278 = vector.extract_strided_slice %250 {offsets = [0, 8], sizes = [16, 8], strides = [1, 1]} : vector<16x32xf32> to vector<16x8xf32>
    %279 = vector.extract_strided_slice %250 {offsets = [0, 16], sizes = [16, 8], strides = [1, 1]} : vector<16x32xf32> to vector<16x8xf32>
    %280 = vector.extract_strided_slice %250 {offsets = [0, 24], sizes = [16, 8], strides = [1, 1]} : vector<16x32xf32> to vector<16x8xf32>
    %281 = vector.shape_cast %277 : vector<16x8xf32> to vector<1x16x8xf32>
    %282 = vector.shape_cast %278 : vector<16x8xf32> to vector<1x16x8xf32>
    %283 = vector.shape_cast %279 : vector<16x8xf32> to vector<1x16x8xf32>
    %284 = vector.shape_cast %280 : vector<16x8xf32> to vector<1x16x8xf32>
    %285 = tpu.concatenate %281, %282, %283, %284 in 0 : vector<1x16x8xf32>, vector<1x16x8xf32>, vector<1x16x8xf32>, vector<1x16x8xf32> -> vector<4x16x8xf32>
    %286 = arith.truncf %285 : vector<4x16x8xf32> to vector<4x16x8xbf16>
    %287 = vector.extract_strided_slice %266 {offsets = [0, 0, 0], sizes = [4, 8, 8], strides = [1, 1, 1]} : vector<4x16x8xbf16> to vector<4x8x8xbf16>
    %288 = vector.extract_strided_slice %276 {offsets = [0, 0, 0], sizes = [4, 8, 8], strides = [1, 1, 1]} : vector<4x16x8xbf16> to vector<4x8x8xbf16>
    %289 = vector.extract_strided_slice %286 {offsets = [0, 0, 0], sizes = [4, 8, 8], strides = [1, 1, 1]} : vector<4x16x8xbf16> to vector<4x8x8xbf16>
    "tpu.trace_start"() <{level = 10 : i32, message = "hqd,hkd->hqk"}> : () -> ()
    %cst_45 = arith.constant dense<0.000000e+00> : vector<4x8x8xf32>
    %290 = tpu.matmul %287, %288, %cst_45 {dimension_numbers = #tpu.dot_dimension_numbers<[2], [2], [1], [1], [0, 0, 0, 1, 1, 1], [0], [0]>} : vector<4x8x8xbf16>, vector<4x8x8xbf16>, vector<4x8x8xf32> -> vector<4x8x8xf32>
    "tpu.trace_stop"() : () -> ()
    %cst_46 = arith.constant 0.353553385 : f32
    %291 = vector.broadcast %cst_46 : f32 to vector<4x8x8xf32>
    %292 = arith.mulf %290, %291 : vector<4x8x8xf32>
    %cst_47 = arith.constant -1.000000e+09 : f32
    %293 = vector.shape_cast %253 : vector<1x8xi1> to vector<1x1x8xi1>
    %294 = vector.broadcast %293 : vector<1x1x8xi1> to vector<4x8x8xi1>
    %295 = vector.broadcast %cst_47 : f32 to vector<4x8x8xf32>
    %296 = arith.select %294, %292, %295 : vector<4x8x8xi1>, vector<4x8x8xf32>
    %cst_48 = arith.constant dense<0xFF800000> : vector<4x8xf32>
    %297 = vector.multi_reduction <maximumf>, %296, %cst_48 [2] : vector<4x8x8xf32> to vector<4x8xf32>
    %298 = vector.shape_cast %297 : vector<4x8xf32> to vector<4x8x1xf32>
    %299 = vector.broadcast %298 : vector<4x8x1xf32> to vector<4x8x8xf32>
    %300 = arith.subf %296, %299 : vector<4x8x8xf32>
    %301 = math.exp %300 : vector<4x8x8xf32>
    %cst_49 = arith.constant dense<0.000000e+00> : vector<4x8xf32>
    %302 = vector.multi_reduction <add>, %301, %cst_49 [2] : vector<4x8x8xf32> to vector<4x8xf32>
    %303 = vector.shape_cast %302 : vector<4x8xf32> to vector<4x8x1xf32>
    %304 = tpu.reciprocal %303 {approx = true} : vector<4x8x1xf32> -> vector<4x8x1xf32>
    %305 = vector.broadcast %304 : vector<4x8x1xf32> to vector<4x8x8xf32>
    %306 = arith.mulf %301, %305 : vector<4x8x8xf32>
    %307 = arith.truncf %306 : vector<4x8x8xf32> to vector<4x8x8xbf16>
    "tpu.trace_start"() <{level = 10 : i32, message = "hqk,hkd->hqd"}> : () -> ()
    %cst_50 = arith.constant dense<0.000000e+00> : vector<4x8x8xf32>
    %308 = tpu.matmul %307, %289, %cst_50 {dimension_numbers = #tpu.dot_dimension_numbers<[2], [1], [1], [2], [0, 0, 0, 1, 1, 2], [0], [0]>} : vector<4x8x8xbf16>, vector<4x8x8xbf16>, vector<4x8x8xf32> -> vector<4x8x8xf32>
    "tpu.trace_stop"() : () -> ()
    %309 = vector.extract_strided_slice %308 {offsets = [0, 0, 0], sizes = [1, 8, 8], strides = [1, 1, 1]} : vector<4x8x8xf32> to vector<1x8x8xf32>
    %310 = vector.shape_cast %309 : vector<1x8x8xf32> to vector<8x8xf32>
    %311 = arith.truncf %310 : vector<8x8xf32> to vector<8x8xbf16>
    %312 = vector.extract_strided_slice %42 {offsets = [0, 0], sizes = [8, 32], strides = [1, 1]} : vector<32x32xbf16> to vector<8x32xbf16>
    %cst_51 = arith.constant dense<0.000000e+00> : vector<8x32xf32>
    %313 = tpu.matmul %311, %312, %cst_51 {dimension_numbers = #tpu.dot_dimension_numbers<[1], [0], [0], [1], [0, 0, 1, 1], [], []>} : vector<8x8xbf16>, vector<8x32xbf16>, vector<8x32xf32> -> vector<8x32xf32>
    %314 = vector.shape_cast %33 : vector<32xf32> to vector<1x32xf32>
    %315 = vector.broadcast %314 : vector<1x32xf32> to vector<8x32xf32>
    %316 = arith.addf %315, %313 : vector<8x32xf32>
    %317 = vector.extract_strided_slice %308 {offsets = [1, 0, 0], sizes = [1, 8, 8], strides = [1, 1, 1]} : vector<4x8x8xf32> to vector<1x8x8xf32>
    %318 = vector.shape_cast %317 : vector<1x8x8xf32> to vector<8x8xf32>
    %319 = arith.truncf %318 : vector<8x8xf32> to vector<8x8xbf16>
    %320 = vector.extract_strided_slice %42 {offsets = [8, 0], sizes = [8, 32], strides = [1, 1]} : vector<32x32xbf16> to vector<8x32xbf16>
    %cst_52 = arith.constant dense<0.000000e+00> : vector<8x32xf32>
    %321 = tpu.matmul %319, %320, %cst_52 {dimension_numbers = #tpu.dot_dimension_numbers<[1], [0], [0], [1], [0, 0, 1, 1], [], []>} : vector<8x8xbf16>, vector<8x32xbf16>, vector<8x32xf32> -> vector<8x32xf32>
    %322 = arith.addf %316, %321 : vector<8x32xf32>
    %323 = vector.extract_strided_slice %308 {offsets = [2, 0, 0], sizes = [1, 8, 8], strides = [1, 1, 1]} : vector<4x8x8xf32> to vector<1x8x8xf32>
    %324 = vector.shape_cast %323 : vector<1x8x8xf32> to vector<8x8xf32>
    %325 = arith.truncf %324 : vector<8x8xf32> to vector<8x8xbf16>
    %326 = vector.extract_strided_slice %42 {offsets = [16, 0], sizes = [8, 32], strides = [1, 1]} : vector<32x32xbf16> to vector<8x32xbf16>
    %cst_53 = arith.constant dense<0.000000e+00> : vector<8x32xf32>
    %327 = tpu.matmul %325, %326, %cst_53 {dimension_numbers = #tpu.dot_dimension_numbers<[1], [0], [0], [1], [0, 0, 1, 1], [], []>} : vector<8x8xbf16>, vector<8x32xbf16>, vector<8x32xf32> -> vector<8x32xf32>
    %328 = arith.addf %322, %327 : vector<8x32xf32>
    %329 = vector.extract_strided_slice %308 {offsets = [3, 0, 0], sizes = [1, 8, 8], strides = [1, 1, 1]} : vector<4x8x8xf32> to vector<1x8x8xf32>
    %330 = vector.shape_cast %329 : vector<1x8x8xf32> to vector<8x8xf32>
    %331 = arith.truncf %330 : vector<8x8xf32> to vector<8x8xbf16>
    %332 = vector.extract_strided_slice %42 {offsets = [24, 0], sizes = [8, 32], strides = [1, 1]} : vector<32x32xbf16> to vector<8x32xbf16>
    %cst_54 = arith.constant dense<0.000000e+00> : vector<8x32xf32>
    %333 = tpu.matmul %331, %332, %cst_54 {dimension_numbers = #tpu.dot_dimension_numbers<[1], [0], [0], [1], [0, 0, 1, 1], [], []>} : vector<8x8xbf16>, vector<8x32xbf16>, vector<8x32xf32> -> vector<8x32xf32>
    %334 = arith.addf %328, %333 : vector<8x32xf32>
    %335 = vector.extract_strided_slice %266 {offsets = [0, 8, 0], sizes = [4, 8, 8], strides = [1, 1, 1]} : vector<4x16x8xbf16> to vector<4x8x8xbf16>
    %336 = vector.extract_strided_slice %276 {offsets = [0, 8, 0], sizes = [4, 8, 8], strides = [1, 1, 1]} : vector<4x16x8xbf16> to vector<4x8x8xbf16>
    %337 = vector.extract_strided_slice %286 {offsets = [0, 8, 0], sizes = [4, 8, 8], strides = [1, 1, 1]} : vector<4x16x8xbf16> to vector<4x8x8xbf16>
    "tpu.trace_start"() <{level = 10 : i32, message = "hqd,hkd->hqk"}> : () -> ()
    %cst_55 = arith.constant dense<0.000000e+00> : vector<4x8x8xf32>
    %338 = tpu.matmul %335, %336, %cst_55 {dimension_numbers = #tpu.dot_dimension_numbers<[2], [2], [1], [1], [0, 0, 0, 1, 1, 1], [0], [0]>} : vector<4x8x8xbf16>, vector<4x8x8xbf16>, vector<4x8x8xf32> -> vector<4x8x8xf32>
    "tpu.trace_stop"() : () -> ()
    %cst_56 = arith.constant 0.353553385 : f32
    %339 = vector.broadcast %cst_56 : f32 to vector<4x8x8xf32>
    %340 = arith.mulf %338, %339 : vector<4x8x8xf32>
    %cst_57 = arith.constant -1.000000e+09 : f32
    %341 = vector.shape_cast %256 : vector<1x8xi1> to vector<1x1x8xi1>
    %342 = vector.broadcast %341 : vector<1x1x8xi1> to vector<4x8x8xi1>
    %343 = vector.broadcast %cst_57 : f32 to vector<4x8x8xf32>
    %344 = arith.select %342, %340, %343 : vector<4x8x8xi1>, vector<4x8x8xf32>
    %cst_58 = arith.constant dense<0xFF800000> : vector<4x8xf32>
    %345 = vector.multi_reduction <maximumf>, %344, %cst_58 [2] : vector<4x8x8xf32> to vector<4x8xf32>
    %346 = vector.shape_cast %345 : vector<4x8xf32> to vector<4x8x1xf32>
    %347 = vector.broadcast %346 : vector<4x8x1xf32> to vector<4x8x8xf32>
    %348 = arith.subf %344, %347 : vector<4x8x8xf32>
    %349 = math.exp %348 : vector<4x8x8xf32>
    %cst_59 = arith.constant dense<0.000000e+00> : vector<4x8xf32>
    %350 = vector.multi_reduction <add>, %349, %cst_59 [2] : vector<4x8x8xf32> to vector<4x8xf32>
    %351 = vector.shape_cast %350 : vector<4x8xf32> to vector<4x8x1xf32>
    %352 = tpu.reciprocal %351 {approx = true} : vector<4x8x1xf32> -> vector<4x8x1xf32>
    %353 = vector.broadcast %352 : vector<4x8x1xf32> to vector<4x8x8xf32>
    %354 = arith.mulf %349, %353 : vector<4x8x8xf32>
    %355 = arith.truncf %354 : vector<4x8x8xf32> to vector<4x8x8xbf16>
    "tpu.trace_start"() <{level = 10 : i32, message = "hqk,hkd->hqd"}> : () -> ()
    %cst_60 = arith.constant dense<0.000000e+00> : vector<4x8x8xf32>
    %356 = tpu.matmul %355, %337, %cst_60 {dimension_numbers = #tpu.dot_dimension_numbers<[2], [1], [1], [2], [0, 0, 0, 1, 1, 2], [0], [0]>} : vector<4x8x8xbf16>, vector<4x8x8xbf16>, vector<4x8x8xf32> -> vector<4x8x8xf32>
    "tpu.trace_stop"() : () -> ()
    %357 = vector.extract_strided_slice %356 {offsets = [0, 0, 0], sizes = [1, 8, 8], strides = [1, 1, 1]} : vector<4x8x8xf32> to vector<1x8x8xf32>
    %358 = vector.shape_cast %357 : vector<1x8x8xf32> to vector<8x8xf32>
    %359 = arith.truncf %358 : vector<8x8xf32> to vector<8x8xbf16>
    %360 = vector.extract_strided_slice %42 {offsets = [0, 0], sizes = [8, 32], strides = [1, 1]} : vector<32x32xbf16> to vector<8x32xbf16>
    %cst_61 = arith.constant dense<0.000000e+00> : vector<8x32xf32>
    %361 = tpu.matmul %359, %360, %cst_61 {dimension_numbers = #tpu.dot_dimension_numbers<[1], [0], [0], [1], [0, 0, 1, 1], [], []>} : vector<8x8xbf16>, vector<8x32xbf16>, vector<8x32xf32> -> vector<8x32xf32>
    %362 = vector.shape_cast %33 : vector<32xf32> to vector<1x32xf32>
    %363 = vector.broadcast %362 : vector<1x32xf32> to vector<8x32xf32>
    %364 = arith.addf %363, %361 : vector<8x32xf32>
    %365 = vector.extract_strided_slice %356 {offsets = [1, 0, 0], sizes = [1, 8, 8], strides = [1, 1, 1]} : vector<4x8x8xf32> to vector<1x8x8xf32>
    %366 = vector.shape_cast %365 : vector<1x8x8xf32> to vector<8x8xf32>
    %367 = arith.truncf %366 : vector<8x8xf32> to vector<8x8xbf16>
    %368 = vector.extract_strided_slice %42 {offsets = [8, 0], sizes = [8, 32], strides = [1, 1]} : vector<32x32xbf16> to vector<8x32xbf16>
    %cst_62 = arith.constant dense<0.000000e+00> : vector<8x32xf32>
    %369 = tpu.matmul %367, %368, %cst_62 {dimension_numbers = #tpu.dot_dimension_numbers<[1], [0], [0], [1], [0, 0, 1, 1], [], []>} : vector<8x8xbf16>, vector<8x32xbf16>, vector<8x32xf32> -> vector<8x32xf32>
    %370 = arith.addf %364, %369 : vector<8x32xf32>
    %371 = vector.extract_strided_slice %356 {offsets = [2, 0, 0], sizes = [1, 8, 8], strides = [1, 1, 1]} : vector<4x8x8xf32> to vector<1x8x8xf32>
    %372 = vector.shape_cast %371 : vector<1x8x8xf32> to vector<8x8xf32>
    %373 = arith.truncf %372 : vector<8x8xf32> to vector<8x8xbf16>
    %374 = vector.extract_strided_slice %42 {offsets = [16, 0], sizes = [8, 32], strides = [1, 1]} : vector<32x32xbf16> to vector<8x32xbf16>
    %cst_63 = arith.constant dense<0.000000e+00> : vector<8x32xf32>
    %375 = tpu.matmul %373, %374, %cst_63 {dimension_numbers = #tpu.dot_dimension_numbers<[1], [0], [0], [1], [0, 0, 1, 1], [], []>} : vector<8x8xbf16>, vector<8x32xbf16>, vector<8x32xf32> -> vector<8x32xf32>
    %376 = arith.addf %370, %375 : vector<8x32xf32>
    %377 = vector.extract_strided_slice %356 {offsets = [3, 0, 0], sizes = [1, 8, 8], strides = [1, 1, 1]} : vector<4x8x8xf32> to vector<1x8x8xf32>
    %378 = vector.shape_cast %377 : vector<1x8x8xf32> to vector<8x8xf32>
    %379 = arith.truncf %378 : vector<8x8xf32> to vector<8x8xbf16>
    %380 = vector.extract_strided_slice %42 {offsets = [24, 0], sizes = [8, 32], strides = [1, 1]} : vector<32x32xbf16> to vector<8x32xbf16>
    %cst_64 = arith.constant dense<0.000000e+00> : vector<8x32xf32>
    %381 = tpu.matmul %379, %380, %cst_64 {dimension_numbers = #tpu.dot_dimension_numbers<[1], [0], [0], [1], [0, 0, 1, 1], [], []>} : vector<8x8xbf16>, vector<8x32xbf16>, vector<8x32xf32> -> vector<8x32xf32>
    %382 = arith.addf %376, %381 : vector<8x32xf32>
    %383 = tpu.concatenate %334, %382 in 0 : vector<8x32xf32>, vector<8x32xf32> -> vector<16x32xf32>
    %384 = arith.addf %212, %383 : vector<16x32xf32>
    %cst_65 = arith.constant dense<0.000000e+00> : vector<16xf32>
    %385 = vector.multi_reduction <add>, %384, %cst_65 [1] : vector<16x32xf32> to vector<16xf32>
    %386 = vector.shape_cast %385 : vector<16xf32> to vector<16x1xf32>
    %cst_66 = arith.constant 3.200000e+01 : f32
    %387 = vector.broadcast %cst_66 : f32 to vector<16x1xf32>
    %388 = arith.divf %386, %387 : vector<16x1xf32>
    %389 = vector.broadcast %388 : vector<16x1xf32> to vector<16x32xf32>
    %390 = arith.subf %384, %389 : vector<16x32xf32>
    %391 = arith.mulf %390, %390 : vector<16x32xf32>
    %cst_67 = arith.constant dense<0.000000e+00> : vector<16xf32>
    %392 = vector.multi_reduction <add>, %391, %cst_67 [1] : vector<16x32xf32> to vector<16xf32>
    %393 = vector.shape_cast %392 : vector<16xf32> to vector<16x1xf32>
    %cst_68 = arith.constant 0.0322580636 : f32
    %394 = vector.broadcast %cst_68 : f32 to vector<16x1xf32>
    %395 = arith.mulf %393, %394 : vector<16x1xf32>
    %396 = math.sqrt %395 : vector<16x1xf32>
    %cst_69 = arith.constant 9.99999997E-7 : f32
    %397 = vector.broadcast %cst_69 : f32 to vector<16x1xf32>
    %398 = arith.addf %396, %397 : vector<16x1xf32>
    %399 = tpu.reciprocal %398 {approx = true} : vector<16x1xf32> -> vector<16x1xf32>
    %400 = vector.broadcast %399 : vector<16x1xf32> to vector<16x32xf32>
    %401 = arith.mulf %390, %400 : vector<16x32xf32>
    %402 = vector.shape_cast %15 : vector<32xf32> to vector<1x32xf32>
    %403 = vector.broadcast %402 : vector<1x32xf32> to vector<16x32xf32>
    %404 = arith.mulf %403, %401 : vector<16x32xf32>
    %405 = vector.shape_cast %17 : vector<32xf32> to vector<1x32xf32>
    %406 = vector.broadcast %405 : vector<1x32xf32> to vector<16x32xf32>
    %407 = arith.addf %404, %406 : vector<16x32xf32>
    %408 = arith.truncf %407 : vector<16x32xf32> to vector<16x32xbf16>
    %cst_70 = arith.constant dense<0.000000e+00> : vector<16x64xf32>
    %409 = tpu.matmul %408, %43, %cst_70 {dimension_numbers = #tpu.dot_dimension_numbers<[1], [0], [0], [1], [0, 0, 1, 1], [], []>} : vector<16x32xbf16>, vector<32x64xbf16>, vector<16x64xf32> -> vector<16x64xf32>
    %410 = vector.shape_cast %35 : vector<64xf32> to vector<1x64xf32>
    %411 = vector.broadcast %410 : vector<1x64xf32> to vector<16x64xf32>
    %412 = arith.addf %409, %411 : vector<16x64xf32>
    %cst_71 = arith.constant 0.000000e+00 : f32
    %413 = vector.broadcast %cst_71 : f32 to vector<16x64xf32>
    %414 = arith.maximumf %412, %413 : vector<16x64xf32>
    %415 = arith.truncf %414 : vector<16x64xf32> to vector<16x64xbf16>
    %cst_72 = arith.constant dense<0.000000e+00> : vector<16x32xf32>
    %416 = tpu.matmul %415, %44, %cst_72 {dimension_numbers = #tpu.dot_dimension_numbers<[1], [0], [0], [1], [0, 0, 1, 1], [], []>} : vector<16x64xbf16>, vector<64x32xbf16>, vector<16x32xf32> -> vector<16x32xf32>
    %417 = vector.shape_cast %37 : vector<32xf32> to vector<1x32xf32>
    %418 = vector.broadcast %417 : vector<1x32xf32> to vector<16x32xf32>
    %419 = arith.addf %416, %418 : vector<16x32xf32>
    %420 = arith.addf %384, %419 : vector<16x32xf32>
    %c0_73 = arith.constant 0 : index
    %c0_74 = arith.constant 0 : index
    %421 = vector.load %arg6[%c0_73, %c0_74] : memref<16x32xf32, #tpu.memory_space<vmem>>, vector<16x32xf32>
    tpu.vector_store %arg6[%c0_73, %c0_74], %420 {strides = array<i32>} : memref<16x32xf32, #tpu.memory_space<vmem>>, vector<16x32xf32>,
    return
  }
}

</mosaic_0001>

<bundles_post_ra>
// kernel: tpu_custom_call.1
= control target key start
LH: loop header
LB: loop body
LE: loop exit
PB: predicated region body
PF: predicated region fallthrough
CT: control target
= control target key end

     0   :  { %vm53_vm0 = vcmask 261120   ;;  %s4891_s0 = inlined_call_operand.vmem [shape: f32[16,32], index: 0, kind: input, shape index: {}]   ;;  %s4892_s1 = inlined_call_operand.vmem [shape: f32[16,32], index: 1, kind: input, shape index: {}]   ;;  %s4893_s2 = inlined_call_operand.vmem [shape: f32[2,8], index: 2, kind: input, shape index: {}]   ;;  %s4894_s3 = inlined_call_operand.vmem [shape: bf16[32,256], index: 3, kind: input, shape index: {}]   ;;  %s4895_s4 = inlined_call_operand.vmem [shape: bf16[96,64], index: 4, kind: input, shape index: {}]   ;;  %s4896_s5 = inlined_call_operand.vmem [shape: f32[16,64], index: 5, kind: input, shape index: {}]   ;;  %s4897_s6 = inlined_call_operand.hbm [shape: f32[16,32], index: 6, kind: output, shape index: {}]  }
   0x1   :  { %v4114_v0 = vld [vmem:[%s4891_s0] sm:$0xff]  ;;  %v26_v1 = vld [vmem:[%s4891_s0 + $0x8] sm:$0xff] }
   0x2   :  { %v54_v2 = vsel %vm53_vm0, %v4114_v0, 0.0  ;;  %v57_v3 = vsel %vm53_vm0, %v26_v1, 0.0 }
   0x3   :  { %55 = vadd.xlane.f32.xlu0 %v54_v2 }
   0x4   :  { %11 = vsyncpa [#allocation3], 0  ;;  %v4128_v14 = vld [vmem:[%s4894_s3] sm:$0xff]  ;;  %v4133_v15 = vld [vmem:[%s4894_s3 + $0x8] sm:$0xff]  ;;  %v4064_v17 = vmov 0.0   ;;  %vm4065_vm1 = vmmov 0   ;;  %v48_v21 = vlaneseq }
   0x5   :  { %v4138_v16 = vld [vmem:[%s4894_s3 + $0x10] sm:$0xff]  ;;  %3491 = vmatprep.subr.bf16.mxu1 %v4064_v17  ;;  %v3307_v18 = vcombine.low %v4128_v14, %v4133_v15  ;;  %v4146_v19 = vld [vmem:[%s4894_s3 + $0x18] sm:$0xff]  ;;  %3495 = vmatprep.mubr.msk.bf16.mxu1 %vm4065_vm1, %v4064_v17  ;;  %v46_v24 = vld [vmem:[%s4896_s5] sm:$0xff]  ;;  %s4066_s11 = smov 32   ;;  %s4067_s12 = smov 120   ;;  %vm265_vm6 = vcmask 64512  }
   0x6   :  { %3505 = vmatprep.subr.bf16.mxu0 %v4064_v17  ;;  %3507 = vmatprep.mubr.msk.bf16.mxu0 %vm4065_vm1, %v4064_v17  ;;  %v3308_v20 = vcombine.low %v4138_v16, %v4146_v19  ;;  %v4158_v22 = vshrl.u32 %v48_v21, 7  ;;  %s4068_s13 = smov 96   ;;  %s4069_s14 = smov 112   ;;  %vm523_vm8 = vcmask 1043456  }
   0x7   :  { %58 = vadd.xlane.f32.xlu0 %v57_v3  ;;  %3492 = vmatpush3.bf16.msra.mxu1 %v3307_v18  ;;  %s4070_s15 = smov 104   ;;  %s4071_s18 = smov 64  }
   0x8   :  { %3493 = vmatprep.subr.bf16.mxu1 %v4064_v17  ;;  %v172_v23 = vsub.s32 7, %v4158_v22  ;;  %v4168_v42 = vsub.s32 0, %v4158_v22  ;;  %v4172_v46 = vsub.s32 1, %v4158_v22  ;;  %v166_v55 = vsub.s32 6, %v4158_v22 }
   0xa   :  { %v173_v25 = vrot.slane %v46_v24, %v172_v23  ;;  %v98_v45 = vrot.slane %v46_v24, %v4168_v42  ;;  %v104_v50 = vrot.slane %v46_v24, %v4172_v46  ;;  %v167_v56 = vrot.slane %v46_v24, %v166_v55 }
   0xb   :  { %3494 = vmatpush3.bf16.msra.mxu1 %v3308_v20 }
   0xc   :  { %3499 = vmatprep.subr.bf16.mxu1 %v4064_v17 }
  0x1d   :  { %175 = vrot.lane.b32.xlu0 %v173_v25, %s4066_s11 }
  0x90   :  { %v56_v4 = vpop.xlane.xlu0 %55 }
  0x91   :  { %v61_v5 = vmul.f32 0.03125, %v56_v4 }
  0x93   :  { %v63_v6 = vsub.f32 %v4114_v0, %v61_v5 }
  0x94   :  { %v59_v7 = vpop.xlane.xlu0 %58 }
  0x95   :  { %v62_v8 = vmul.f32 0.03125, %v59_v7  ;;  %v65_v9 = vmul.f32 %v63_v6, %v63_v6 }
  0x97   :  { %v64_v10 = vsub.f32 %v26_v1, %v62_v8  ;;  %v67_v11 = vsel %vm53_vm0, %v65_v9, 0.0 }
  0x98   :  { %68 = vadd.xlane.f32.xlu1 %v67_v11  ;;  %v176_v58 = vpop.permute.xlu0 %175 }
  0x99   :  { %v66_v12 = vmul.f32 %v64_v10, %v64_v10 }
  0x9b   :  { %v70_v13 = vsel %vm53_vm0, %v66_v12, 0.0 }
  0x9c   :  { %71 = vadd.xlane.f32.xlu1 %v70_v13 }
 0x125   :  { %v69_v26 = vpop.xlane.xlu1 %68 }
 0x126   :  { %v73_v27 = vmul.f32 0.032258064, %v69_v26 }
 0x128   :  { %3943 = vrsqrt.f32 %v73_v27  ;;  %vm77_vm2 = vcmp.eq.f32.partialorder %v73_v27, inf  ;;  %v80_v32 = vand.u32 2147483648, %v73_v27  ;;  %vm79_vm3 = vcmp.eq.f32.partialorder %v73_v27, 0.0 }
 0x129   :  { %v72_v28 = vpop.xlane.xlu1 %71 }
 0x12a   :  { %v74_v29 = vmul.f32 0.032258064, %v72_v28  ;;  %v4214_v28 = vld [vmem:[%s4896_s5 + $0x8] sm:$0xff] }
 0x12c   :  { %3945 = vrsqrt.f32 %v74_v29  ;;  %vm84_vm4 = vcmp.eq.f32.partialorder %v74_v29, inf  ;;  %v87_v38 = vand.u32 2147483648, %v74_v29  ;;  %vm86_vm5 = vcmp.eq.f32.partialorder %v74_v29, 0.0 }
 0x132   :  { %v3944_v30 = vpop.eup %3943 }
 0x133   :  { %v76_v31 = vmul.f32 %v3944_v30, %v73_v27  ;;  %v183_v30 = vrot.slane %v4214_v28, %v4168_v42 }
 0x135   :  { %v78_v33 = vsel %vm77_vm2, %v73_v27, %v76_v31 }
 0x136   :  { %v3946_v34 = vpop.eup %3945  ;;  %v81_v35 = vsel %vm79_vm3, %v80_v32, %v78_v33 }
 0x137   :  { %v89_v36 = vadd.f32 1e-06, %v81_v35  ;;  %v83_v37 = vmul.f32 %v3946_v34, %v74_v29 }
 0x139   :  { %3947 = vrcp.f32 %v89_v36  ;;  %v85_v39 = vsel %vm84_vm4, %v74_v29, %v83_v37 }
 0x13a   :  { %v88_v40 = vsel %vm86_vm5, %v87_v38, %v85_v39  ;;  %vm3242_vm5 = vcmask 523264  }
 0x13b   :  { %v90_v41 = vadd.f32 1e-06, %v88_v40 }
 0x13d   :  { %3949 = vrcp.f32 %v90_v41 }
 0x143   :  { %v3948_v43 = vpop.eup %3947 }
 0x144   :  { %v93_v44 = vmul.f32 %v3948_v43, %v63_v6 }
 0x146   :  { %v99_v49 = vmul.f32 %v98_v45, %v93_v44 }
 0x147   :  { %v3950_v47 = vpop.eup %3949 }
 0x148   :  { %v94_v48 = vmul.f32 %v3950_v47, %v64_v10  ;;  %v105_v52 = vadd.f32 %v104_v50, %v99_v49 }
 0x14a   :  { %v100_v51 = vmul.f32 %v98_v45, %v94_v48 }
 0x14c   :  { %v106_v53 = vadd.f32 %v104_v50, %v100_v51 }
 0x14e   :  { %v107_v54 = vpack.c.bf16 %v106_v53, %v105_v52 }
 0x150   :  { %3496 = vmatmul.mubr.msk.bf16.vlgmr.msra.gmra.mrb[0].mxu1 %vm53_vm0, %v107_v54 }
 0x151   :  { %3501 = vmatprep.mubr.msk.bf16.mxu1 %vm4065_vm1, %v4064_v17 }
 0x223   :  { %v4181_v57 = vpop.f32.mrb[0].mxu1 }
 0x224   :  { %v3497_v59 = vpop.f32.mrb[1].mxu1  ;;  %v168_v61 = vadd.f32 %v167_v56, %v4181_v57  ;;  %v178_v62 = vadd.f32 %v176_v58, %v4181_v57 }
 0x225   :  { %v4183_v60 = vpop.f32.mrb[2].mxu1 }
 0x226   :  { %v169_v63 = vadd.f32 %v167_v56, %v4183_v60  ;;  %v179_v1 = vadd.f32 %v176_v58, %v4183_v60  ;;  %v3498_v2 = vpop.f32.mrb[3].mxu1 }
 0x228   :  { %v4189_v3 = vpack.c.bf16 %v169_v63, %v168_v61  ;;  %v3835_v4 = vpack.i.bf16 %v179_v1, %v178_v62  ;;  %v4191_v5 = vpack.c.bf16 %v179_v1, %v178_v62  ;;  %v3850_v6 = vpack.i.bf16 %v169_v63, %v168_v61 }
 0x22a   :  { %3836 = vrot.lane.b32.xlu1 %v3835_v4, %s4067_s12  ;;  %263 = vrot.lane.b32.xlu0 %v4191_v5, %s4068_s13 }
 0x22e   :  { %3841 = vrot.lane.b32.xlu1 %v3835_v4, %s4069_s14  ;;  %3851 = vrot.lane.b32.xlu0 %v3850_v6, %s4067_s12 }
 0x232   :  { %3846 = vrot.lane.b32.xlu1 %v3835_v4, %s4070_s15 }
 0x29c   :  { %v3837_v7 = vpop.permute.xlu1 %3836  ;;  %v264_v8 = vpop.permute.xlu0 %263 }
 0x29d   :  { %v3839_v9 = vunpack.i.h.bf16 %v3837_v7  ;;  %v3838_v10 = vunpack.i.l.bf16 %v3837_v7  ;;  %v270_v11 = vsel %vm265_vm6, %v264_v8, 0 }
 0x29e   :  { %3500 = vmatpush3.bf16.xpose.msra.mxu1 %v270_v11 }
 0x29f   :  { %v4200_v12 = vpack.c.bf16 %v3839_v9, %v3838_v10  ;;  %3511 = vmatprep.subr.bf16.mxu1 %v4064_v17 }
 0x2a0   :  { %v3842_v13 = vpop.permute.xlu1 %3841  ;;  %v3852_v31 = vpop.permute.xlu0 %3851 }
 0x2a1   :  { %v3844_v18 = vunpack.i.h.bf16 %v3842_v13  ;;  %v3843_v20 = vunpack.i.l.bf16 %v3842_v13  ;;  %313 = vrot.lane.b32.xlu1 %v4200_v12, %s4068_s13  ;;  %v3854_v34 = vunpack.i.h.bf16 %v3852_v31  ;;  %v3853_v35 = vunpack.i.l.bf16 %v3852_v31 }
 0x2a3   :  { %v4205_v24 = vpack.c.bf16 %v3844_v18, %v3843_v20  ;;  %v4230_v38 = vpack.c.bf16 %v3854_v34, %v3853_v35 }
 0x2a4   :  { %v3847_v25 = vpop.permute.xlu1 %3846 }
 0x2a5   :  { %v3849_v26 = vunpack.i.h.bf16 %v3847_v25  ;;  %v3848_v27 = vunpack.i.l.bf16 %v3847_v25  ;;  %362 = vrot.lane.b32.xlu1 %v4205_v24, %s4068_s13  ;;  %3502 = vmatmul.mubr.msk.bf16.vlgmr.msra.gmra.mrb[4].mxu1 %vm265_vm6, %v4189_v3 }
 0x2a6   :  { %3513 = vmatprep.mubr.msk.bf16.mxu1 %vm4065_vm1, %v4064_v17 }
 0x2a7   :  { %v4218_v29 = vpack.c.bf16 %v3849_v26, %v3848_v27 }
 0x2a9   :  { %3856 = vrot.lane.b32.xlu1 %v3850_v6, %s4069_s14  ;;  %411 = vrot.lane.b32.xlu0 %v4218_v29, %s4068_s13 }
 0x2ad   :  { %185 = vrot.lane.b32.xlu1 %v183_v30, %s4071_s18  ;;  %3861 = vrot.lane.b32.xlu0 %v3850_v6, %s4070_s15 }
 0x313   :  { %v314_v32 = vpop.permute.xlu1 %313 }
 0x314   :  { %v319_v33 = vsel %vm265_vm6, %v314_v32, 0 }
 0x315   :  { %3506 = vmatpush3.bf16.xpose.msra.mxu0 %v319_v33 }
 0x316   :  { %3517 = vmatprep.subr.bf16.mxu0 %v4064_v17 }
 0x317   :  { %v363_v36 = vpop.permute.xlu1 %362 }
 0x318   :  { %v368_v37 = vsel %vm265_vm6, %v363_v36, 0 }
 0x319   :  { %3512 = vmatpush3.bf16.xpose.msra.mxu1 %v368_v37 }
 0x31a   :  { %3523 = vmatprep.subr.bf16.mxu1 %v4064_v17 }
 0x31b   :  { %v3857_v39 = vpop.permute.xlu1 %3856  ;;  %v412_v40 = vpop.permute.xlu0 %411 }
 0x31c   :  { %v3859_v41 = vunpack.i.h.bf16 %v3857_v39  ;;  %v3858_v43 = vunpack.i.l.bf16 %v3857_v39  ;;  %v417_v44 = vsel %vm265_vm6, %v412_v40, 0  ;;  %3508 = vmatmul.mubr.msk.bf16.vlgmr.msra.gmra.mrb[0].mxu0 %vm265_vm6, %v4230_v38 }
 0x31d   :  { %3518 = vmatpush3.bf16.xpose.msra.mxu0 %v417_v44  ;;  %3519 = vmatprep.mubr.msk.bf16.mxu0 %vm4065_vm1, %v4064_v17 }
 0x31e   :  { %v4238_v45 = vpack.c.bf16 %v3859_v41, %v3858_v43  ;;  %3529 = vmatprep.subr.bf16.mxu0 %v4064_v17 }
 0x31f   :  { %v186_v47 = vpop.permute.xlu1 %185  ;;  %v3862_v48 = vpop.permute.xlu0 %3861 }
 0x320   :  { %v188_v49 = vadd.f32 %v186_v47, %v4181_v57  ;;  %v189_v50 = vadd.f32 %v186_v47, %v4183_v60  ;;  %v3864_v51 = vunpack.i.h.bf16 %v3862_v48  ;;  %3514 = vmatmul.mubr.msk.bf16.vlgmr.msra.gmra.mrb[8].mxu1 %vm265_vm6, %v4238_v45  ;;  %v3863_v52 = vunpack.i.l.bf16 %v3862_v48 }
 0x321   :  { %3525 = vmatprep.mubr.msk.bf16.mxu1 %vm4065_vm1, %v4064_v17  ;;  %v51_v57 = vand.u32 127, %v48_v21 }
 0x322   :  { %v3870_v53 = vpack.i.bf16 %v189_v50, %v188_v49  ;;  %v4247_v54 = vpack.c.bf16 %v189_v50, %v188_v49  ;;  %v4249_v56 = vpack.c.bf16 %v3864_v51, %v3863_v52 }
 0x323   :  { %vm4257_vm7 = vcmp.ge.s32.totalorder %v4158_v22, %v51_v57 }
 0x324   :  { %3520 = vmatmul.mubr.msk.bf16.vlgmr.msra.gmra.mrb[4].mxu0 %vm265_vm6, %v4249_v56 }
 0x325   :  { %3531 = vmatprep.mubr.msk.bf16.mxu0 %vm4065_vm1, %v4064_v17 }
 0x378   :  { %v306_v58 = vpop.f32.mrb[4].mxu1 }
 0x379   :  { %v459_v60 = vmul.f32 0.35355338, %v306_v58  ;;  %v3503_v61 = vpop.f32.mrb[5].mxu1 }
 0x37a   :  { %v309_v62 = vpop.f32.mrb[6].mxu1 }
 0x37b   :  { %v3504_v63 = vpop.f32.mrb[7].mxu1  ;;  %v465_v1 = vsel %vm4257_vm7, %v459_v60, -1e+09 }
 0x37c   :  { %v469_v2 = vsel %vm265_vm6, %v465_v1, -inf }
 0x37d   :  { %470 = vmax.xlane.f32.xlu0 %v469_v2 }
 0x3ef   :  { %v355_v4 = vpop.f32.mrb[0].mxu0 }
 0x3f0   :  { %v460_v6 = vmul.f32 0.35355338, %v355_v4  ;;  %v3509_v7 = vpop.f32.mrb[1].mxu0 }
 0x3f1   :  { %v358_v21 = vpop.f32.mrb[2].mxu0 }
 0x3f2   :  { %v3510_v8 = vpop.f32.mrb[3].mxu0  ;;  %v466_v9 = vsel %vm4257_vm7, %v460_v6, -1e+09  ;;  %v3318_v21 = vcombine.low %v4128_v14, %v4128_v14  ;;  %v924_v14 = vrot.slane %v4191_v5, 4  ;;  %v3320_v5 = vcombine.low %v4133_v15, %v4133_v15 }
 0x3f3   :  { %v404_v10 = vpop.f32.mrb[8].mxu1  ;;  %v472_v11 = vsel %vm265_vm6, %v466_v9, -inf }
 0x3f4   :  { %v461_v13 = vmul.f32 0.35355338, %v404_v10  ;;  %v3515_v18 = vpop.f32.mrb[9].mxu1  ;;  %473 = vmax.xlane.f32.xlu1 %v472_v11  ;;  %v3322_v10 = vcombine.low %v4138_v16, %v4138_v16 }
 0x3f5   :  { %v407_v20 = vpop.f32.mrb[10].mxu1 }
 0x3f6   :  { %v3516_v25 = vpop.f32.mrb[11].mxu1  ;;  %v467_v26 = vsel %vm4257_vm7, %v461_v13, -1e+09 }
 0x3f7   :  { %v475_v27 = vsel %vm265_vm6, %v467_v26, -inf  ;;  %v453_v30 = vpop.f32.mrb[4].mxu0  ;;  %v1026_v25 = vrot.slane %v4205_v24, 4  ;;  %v975_v24 = vrot.slane %v4200_v12, 4 }
 0x3f8   :  { %476 = vmax.xlane.f32.xlu0 %v475_v27  ;;  %v462_v31 = vmul.f32 0.35355338, %v453_v30  ;;  %v3521_v32 = vpop.f32.mrb[5].mxu0 }
 0x3f9   :  { %v456_v33 = vpop.f32.mrb[6].mxu0 }
 0x3fa   :  { %v3522_v34 = vpop.f32.mrb[7].mxu0  ;;  %v468_v35 = vsel %vm4257_vm7, %v462_v31, -1e+09  ;;  %v3324_v31 = vcombine.low %v4146_v19, %v4146_v19  ;;  %v1077_v33 = vrot.slane %v4218_v29, 4 }
 0x3fb   :  { %v478_v36 = vsel %vm265_vm6, %v468_v35, -inf }
 0x3fc   :  { %479 = vmax.xlane.f32.xlu0 %v478_v36 }
 0x405   :  { %3871 = vrot.lane.b32.xlu1 %v3870_v53, %s4069_s14 }
 0x409   :  { %3876 = vrot.lane.b32.xlu1 %v3870_v53, %s4070_s15 }
 0x40a   :  { %v471_v37 = vpop.xlane.xlu0 %470 }
 0x40b   :  { %v481_v39 = vsub.f32 %v465_v1, %v471_v37 }
 0x40d   :  { %518 = vrot.lane.b32.xlu1 %v4247_v54, %s4071_s18  ;;  %v485_v40 = vmul.f32 1.442695, %v481_v39 }
 0x40f   :  { %3951 = vpow2.f32 %v485_v40 }
 0x412   :  { %3866 = vrot.lane.b32.xlu0 %v3870_v53, %s4067_s12 }
 0x419   :  { %v4278_v41 = vpop.eup %3951 }
 0x41a   :  { %v493_v43 = vsel %vm265_vm6, %v4278_v41, 0.0 }
 0x431   :  { %494 = vadd.xlane.f32.xlu1 %v493_v43 }
 0x481   :  { %v474_v44 = vpop.xlane.xlu1 %473 }
 0x482   :  { %v482_v47 = vsub.f32 %v466_v9, %v474_v44 }
 0x484   :  { %v487_v48 = vmul.f32 1.442695, %v482_v47 }
 0x485   :  { %v477_v49 = vpop.xlane.xlu0 %476  ;;  %v3872_v50 = vpop.permute.xlu1 %3871 }
 0x486   :  { %3953 = vpow2.f32 %v487_v48  ;;  %v483_v51 = vsub.f32 %v467_v26, %v477_v49  ;;  %v3874_v52 = vunpack.i.h.bf16 %v3872_v50  ;;  %v3873_v57 = vunpack.i.l.bf16 %v3872_v50 }
 0x488   :  { %v489_v53 = vmul.f32 1.442695, %v483_v51  ;;  %v4282_v58 = vpack.c.bf16 %v3874_v52, %v3873_v57 }
 0x489   :  { %v3877_v60 = vpop.permute.xlu1 %3876  ;;  %v480_v63 = vpop.xlane.xlu0 %479 }
 0x48a   :  { %3955 = vpow2.f32 %v489_v53  ;;  %v3879_v61 = vunpack.i.h.bf16 %v3877_v60  ;;  %v3878_v62 = vunpack.i.l.bf16 %v3877_v60  ;;  %617 = vrot.lane.b32.xlu1 %v4282_v58, %s4071_s18  ;;  %v484_v1 = vsub.f32 %v468_v35, %v480_v63 }
 0x48c   :  { %v4286_v2 = vpack.c.bf16 %v3879_v61, %v3878_v62  ;;  %v491_v4 = vmul.f32 1.442695, %v484_v1 }
 0x48d   :  { %v519_v6 = vpop.permute.xlu1 %518  ;;  %v3867_v26 = vpop.permute.xlu0 %3866 }
 0x48e   :  { %v525_v7 = vsel %vm523_vm8, %v519_v6, 0  ;;  %666 = vrot.lane.b32.xlu1 %v4286_v2, %s4071_s18  ;;  %3957 = vpow2.f32 %v491_v4  ;;  %v3869_v16 = vunpack.i.h.bf16 %v3867_v26  ;;  %v3868_v27 = vunpack.i.l.bf16 %v3867_v26 }
 0x48f   :  { %3524 = vmatpush3.bf16.msra.mxu1 %v525_v7 }
 0x490   :  { %v3954_v8 = vpop.eup %3953  ;;  %3535 = vmatprep.subr.bf16.mxu1 %v4064_v17  ;;  %v4305_v30 = vpack.c.bf16 %v3869_v16, %v3868_v27 }
 0x491   :  { %v496_v9 = vsel %vm265_vm6, %v3954_v8, 0.0 }
 0x492   :  { %716 = vrot.lane.b32.xlu1 %v3318_v21, %s4066_s11  ;;  %497 = vadd.xlane.f32.xlu0 %v496_v9 }
 0x494   :  { %v3956_v11 = vpop.eup %3955 }
 0x495   :  { %v499_v13 = vsel %vm265_vm6, %v3956_v11, 0.0 }
 0x496   :  { %822 = vrot.lane.b32.xlu1 %v3322_v10, %s4066_s11  ;;  %500 = vadd.xlane.f32.xlu0 %v499_v13 }
 0x498   :  { %v3958_v18 = vpop.eup %3957 }
 0x499   :  { %v502_v20 = vsel %vm265_vm6, %v3958_v18, 0.0 }
 0x49a   :  { %925 = vrot.lane.b32.xlu1 %v924_v14, %s4068_s13  ;;  %503 = vadd.xlane.f32.xlu0 %v502_v20 }
 0x49e   :  { %1027 = vrot.lane.b32.xlu1 %v1026_v25, %s4068_s13 }
 0x4b0   :  { %568 = vrot.lane.b32.xlu0 %v4305_v30, %s4071_s18 }
 0x4b4   :  { %771 = vrot.lane.b32.xlu0 %v3320_v5, %s4066_s11 }
 0x4b8   :  { %873 = vrot.lane.b32.xlu0 %v3324_v31, %s4066_s11 }
 0x4bc   :  { %976 = vrot.lane.b32.xlu0 %v975_v24, %s4068_s13 }
 0x4be   :  { %v495_v32 = vpop.xlane.xlu1 %494 }
 0x4bf   :  { %3959 = vrcp.f32 %v495_v32 }
 0x4c0   :  { %1078 = vrot.lane.b32.xlu0 %v1077_v33, %s4068_s13 }
 0x4c9   :  { %v3960_v34 = vpop.eup %3959 }
 0x4ca   :  { %v509_v15 = vmul.f32 %v3960_v34, %v4278_v41 }
 0x4cc   :  { %v513_v35 = vpack.c.bf16 %v509_v15, %v509_v15 }
 0x4ce   :  { %3526 = vmatmul.mubr.msk.bf16.vlgmr.msra.gmra.mrb[12].mxu1 %vm265_vm6, %v513_v35 }
 0x4cf   :  { %3537 = vmatprep.mubr.msk.bf16.mxu1 %vm4065_vm1, %v4064_v17 }
 0x4fc   :  { %v618_v19 = vpop.permute.xlu1 %617 }
 0x4fd   :  { %v623_v12 = vsel %vm523_vm8, %v618_v19, 0 }
 0x4fe   :  { %3536 = vmatpush3.bf16.msra.mxu1 %v623_v12 }
 0x4ff   :  { %3547 = vmatprep.subr.bf16.mxu1 %v4064_v17 }
 0x500   :  { %v667_v40 = vpop.permute.xlu1 %666 }
 0x501   :  { %v672_v51 = vsel %vm523_vm8, %v667_v40, 0 }
 0x504   :  { %v717_v50 = vpop.permute.xlu1 %716 }
 0x505   :  { %v4329_v52 = vsel %vm523_vm8, %v717_v50, 0 }
 0x508   :  { %v823_v1 = vpop.permute.xlu1 %822 }
 0x509   :  { %v4349_v6 = vsel %vm523_vm8, %v823_v1, 0 }
 0x50c   :  { %v926_v13 = vpop.permute.xlu1 %925 }
 0x50d   :  { %v931_v24 = vsel %vm265_vm6, %v926_v13, 0 }
 0x510   :  { %v1028_v19 = vpop.permute.xlu1 %1027 }
 0x51f   :  { %v498_v36 = vpop.xlane.xlu0 %497 }
 0x520   :  { %3961 = vrcp.f32 %v498_v36 }
 0x523   :  { %v501_v29 = vpop.xlane.xlu0 %500 }
 0x524   :  { %3963 = vrcp.f32 %v501_v29  ;;  %v923_v29 = vrot.slane %v4189_v3, 4  ;;  %v974_v3 = vrot.slane %v4230_v38, 4 }
 0x527   :  { %v504_v37 = vpop.xlane.xlu0 %503 }
 0x528   :  { %3965 = vrcp.f32 %v504_v37 }
 0x52a   :  { %v3962_v39 = vpop.eup %3961 }
 0x52b   :  { %v510_v41 = vmul.f32 %v3962_v39, %v3954_v8  ;;  %v569_v43 = vpop.permute.xlu0 %568  ;;  %v1033_v39 = vsel %vm265_vm6, %v1028_v19, 0 }
 0x52c   :  { %v574_v44 = vsel %vm523_vm8, %v569_v43, 0 }
 0x52d   :  { %v514_v47 = vpack.c.bf16 %v510_v41, %v510_v41  ;;  %3530 = vmatpush3.bf16.msra.mxu0 %v574_v44  ;;  %v1025_v41 = vrot.slane %v4238_v45, 4  ;;  %v1076_v44 = vrot.slane %v4249_v56, 4 }
 0x52e   :  { %v3964_v48 = vpop.eup %3963  ;;  %3541 = vmatprep.subr.bf16.mxu0 %v4064_v17 }
 0x52f   :  { %v511_v49 = vmul.f32 %v3964_v48, %v3956_v11  ;;  %v772_v61 = vpop.permute.xlu0 %771 }
 0x530   :  { %3532 = vmatmul.mubr.msk.bf16.vlgmr.msra.gmra.mrb[8].mxu0 %vm265_vm6, %v514_v47  ;;  %v4341_v63 = vsel %vm523_vm8, %v772_v61, 0 }
 0x531   :  { %v515_v57 = vpack.c.bf16 %v511_v49, %v511_v49  ;;  %3542 = vmatpush3.bf16.msra.mxu0 %v672_v51  ;;  %3543 = vmatprep.mubr.msk.bf16.mxu0 %vm4065_vm1, %v4064_v17  ;;  %v4396_v49 = vrot.slane %v4214_v28, %v4172_v46 }
 0x532   :  { %v3966_v53 = vpop.eup %3965  ;;  %3553 = vmatprep.subr.bf16.mxu0 %v4064_v17 }
 0x533   :  { %3538 = vmatmul.mubr.msk.bf16.vlgmr.msra.gmra.mrb[16].mxu1 %vm265_vm6, %v515_v57  ;;  %v512_v60 = vmul.f32 %v3966_v53, %v3958_v18  ;;  %v874_v10 = vpop.permute.xlu0 %873 }
 0x534   :  { %3548 = vmatpush3.bf16.msra.mxu1 %v4329_v52  ;;  %3549 = vmatprep.mubr.msk.bf16.mxu1 %vm4065_vm1, %v4064_v17  ;;  %v4357_v14 = vsel %vm523_vm8, %v874_v10, 0 }
 0x535   :  { %3559 = vmatprep.subr.bf16.mxu1 %v4064_v17  ;;  %v516_v62 = vpack.c.bf16 %v512_v60, %v512_v60 }
 0x537   :  { %v977_v34 = vpop.permute.xlu0 %976 }
 0x538   :  { %3544 = vmatmul.mubr.msk.bf16.vlgmr.msra.gmra.mrb[12].mxu0 %vm265_vm6, %v516_v62  ;;  %v982_v37 = vsel %vm265_vm6, %v977_v34, 0 }
 0x539   :  { %3554 = vmatpush3.bf16.msra.mxu0 %v4341_v63  ;;  %3555 = vmatprep.mubr.msk.bf16.mxu0 %vm4065_vm1, %v4064_v17 }
 0x53a   :  { %3565 = vmatprep.subr.bf16.mxu0 %v4064_v17 }
 0x53b   :  { %v1079_v40 = vpop.permute.xlu0 %1078 }
 0x53c   :  { %v1084_v43 = vsel %vm265_vm6, %v1079_v40, 0 }
 0x5a1   :  { %v561_v4 = vpop.f32.mrb[12].mxu1 }
 0x5a2   :  { %v714_v7 = vpack.c.bf16 %v561_v4, %v561_v4  ;;  %v3527_v21 = vpop.f32.mrb[13].mxu1 }
 0x5a3   :  { %v564_v8 = vpop.f32.mrb[14].mxu1 }
 0x5a4   :  { %v3528_v9 = vpop.f32.mrb[15].mxu1  ;;  %3550 = vmatmul.mubr.msk.bf16.vlgmr.msra.gmra.mrb[20].mxu1 %vm265_vm6, %v714_v7 }
 0x5a5   :  { %3560 = vmatpush3.bf16.msra.mxu1 %v4349_v6  ;;  %3561 = vmatprep.mubr.msk.bf16.mxu1 %vm4065_vm1, %v4064_v17 }
 0x5a6   :  { %3571 = vmatprep.subr.bf16.mxu1 %v4064_v17 }
 0x603   :  { %v610_v11 = vpop.f32.mrb[8].mxu0 }
 0x604   :  { %v769_v18 = vpack.c.bf16 %v610_v11, %v610_v11  ;;  %v3533_v20 = vpop.f32.mrb[9].mxu0 }
 0x605   :  { %v613_v25 = vpop.f32.mrb[10].mxu0 }
 0x606   :  { %v659_v26 = vpop.f32.mrb[16].mxu1  ;;  %v3534_v16 = vpop.f32.mrb[11].mxu0  ;;  %3556 = vmatmul.mubr.msk.bf16.vlgmr.msra.gmra.mrb[16].mxu0 %vm265_vm6, %v769_v18 }
 0x607   :  { %v820_v27 = vpack.c.bf16 %v659_v26, %v659_v26  ;;  %v3539_v5 = vpop.f32.mrb[17].mxu1  ;;  %3566 = vmatpush3.bf16.msra.mxu0 %v4357_v14  ;;  %3567 = vmatprep.mubr.msk.bf16.mxu0 %vm4065_vm1, %v4064_v17 }
 0x608   :  { %v662_v31 = vpop.f32.mrb[18].mxu1  ;;  %3577 = vmatprep.subr.bf16.mxu0 %v4064_v17 }
 0x609   :  { %v3540_v32 = vpop.f32.mrb[19].mxu1  ;;  %3562 = vmatmul.mubr.msk.bf16.vlgmr.msra.gmra.mrb[24].mxu1 %vm265_vm6, %v820_v27 }
 0x60a   :  { %3572 = vmatpush3.bf16.xpose.msra.mxu1 %v931_v24  ;;  %3573 = vmatprep.mubr.msk.bf16.mxu1 %vm4065_vm1, %v4064_v17 }
 0x60b   :  { %3583 = vmatprep.subr.bf16.mxu1 %v4064_v17  ;;  %v708_v33 = vpop.f32.mrb[12].mxu0 }
 0x60c   :  { %v871_v15 = vpack.c.bf16 %v708_v33, %v708_v33  ;;  %v3545_v35 = vpop.f32.mrb[13].mxu0 }
 0x60d   :  { %v711_v12 = vpop.f32.mrb[14].mxu0 }
 0x60e   :  { %v3546_v36 = vpop.f32.mrb[15].mxu0  ;;  %3568 = vmatmul.mubr.msk.bf16.vlgmr.msra.gmra.mrb[20].mxu0 %vm265_vm6, %v871_v15 }
 0x60f   :  { %3579 = vmatprep.mubr.msk.bf16.mxu0 %vm4065_vm1, %v4064_v17 }
 0x610   :  { %3578 = vmatpush3.bf16.xpose.msra.mxu0 %v982_v37 }
 0x611   :  { %3574 = vmatmul.mubr.msk.bf16.vlgmr.msra.gmra.mrb[28].mxu1 %vm265_vm6, %v923_v29  ;;  %3589 = vmatprep.subr.bf16.mxu0 %v4064_v17 }
 0x612   :  { %3584 = vmatpush3.bf16.xpose.msra.mxu1 %v1033_v39  ;;  %3585 = vmatprep.mubr.msk.bf16.mxu1 %vm4065_vm1, %v4064_v17 }
 0x613   :  { %3595 = vmatprep.subr.bf16.mxu1 %v4064_v17 }
 0x617   :  { %3580 = vmatmul.mubr.msk.bf16.vlgmr.msra.gmra.mrb[24].mxu0 %vm265_vm6, %v974_v3 }
 0x618   :  { %3590 = vmatpush3.bf16.xpose.msra.mxu0 %v1084_v43  ;;  %3591 = vmatprep.mubr.msk.bf16.mxu0 %vm4065_vm1, %v4064_v17 }
 0x619   :  { %3586 = vmatmul.mubr.msk.bf16.vlgmr.msra.gmra.mrb[32].mxu1 %vm265_vm6, %v1025_v41  ;;  %3601 = vmatprep.subr.bf16.mxu0 %v4064_v17 }
 0x61a   :  { %3597 = vmatprep.mubr.msk.bf16.mxu1 %vm4065_vm1, %v4064_v17 }
 0x61f   :  { %3592 = vmatmul.mubr.msk.bf16.vlgmr.msra.gmra.mrb[28].mxu0 %vm265_vm6, %v1076_v44 }
 0x620   :  { %3603 = vmatprep.mubr.msk.bf16.mxu0 %vm4065_vm1, %v4064_v17 }
 0x677   :  { %v758_v38 = vpop.f32.mrb[20].mxu1 }
 0x678   :  { %v3551_v45 = vpop.f32.mrb[21].mxu1  ;;  %v768_v50 = vadd.f32 %v4396_v49, %v758_v38 }
 0x679   :  { %v761_v47 = vpop.f32.mrb[22].mxu1  ;;  %v1182_v45 = vrot.slane %v4247_v54, 4 }
 0x67a   :  { %v3552_v48 = vpop.f32.mrb[23].mxu1 }
 0x6d9   :  { %v813_v51 = vpop.f32.mrb[16].mxu0 }
 0x6da   :  { %v819_v57 = vadd.f32 %v813_v51, %v768_v50  ;;  %v3557_v53 = vpop.f32.mrb[17].mxu0 }
 0x6db   :  { %v816_v60 = vpop.f32.mrb[18].mxu0 }
 0x6dc   :  { %v864_v56 = vpop.f32.mrb[24].mxu1  ;;  %v3558_v61 = vpop.f32.mrb[19].mxu0 }
 0x6dd   :  { %v870_v62 = vadd.f32 %v864_v56, %v819_v57  ;;  %v3563_v1 = vpop.f32.mrb[25].mxu1 }
 0x6de   :  { %v867_v4 = vpop.f32.mrb[26].mxu1 }
 0x6df   :  { %v3564_v7 = vpop.f32.mrb[27].mxu1 }
 0x6e1   :  { %v915_v21 = vpop.f32.mrb[20].mxu0 }
 0x6e2   :  { %v4399_v8 = vadd.f32 %v915_v21, %v870_v62  ;;  %v3569_v9 = vpop.f32.mrb[21].mxu0 }
 0x6e3   :  { %v918_v10 = vpop.f32.mrb[22].mxu0 }
 0x6e4   :  { %v967_v11 = vpop.f32.mrb[28].mxu1  ;;  %v3570_v28 = vpop.f32.mrb[23].mxu0 }
 0x6e5   :  { %v1126_v13 = vmul.f32 0.35355338, %v967_v11  ;;  %v3575_v18 = vpop.f32.mrb[29].mxu1 }
 0x6e6   :  { %v970_v20 = vpop.f32.mrb[30].mxu1 }
 0x6e7   :  { %v3576_v25 = vpop.f32.mrb[31].mxu1  ;;  %v1130_v26 = vsel %vm4257_vm7, %v1126_v13, -1e+09  ;;  %v1280_v20 = vrot.slane %v4282_v58, 4 }
 0x6e8   :  { %v1134_v16 = vsel %vm265_vm6, %v1130_v26, -inf  ;;  %v1329_v25 = vrot.slane %v4286_v2, 4 }
 0x6e9   :  { %1135 = vmax.xlane.f32.xlu1 %v1134_v16  ;;  %v4429_v16 = vadd.f32 %v4399_v8, %v4114_v0 }
 0x6ea   :  { %v1018_v27 = vpop.f32.mrb[24].mxu0 }
 0x6eb   :  { %v1127_v5 = vmul.f32 0.35355338, %v1018_v27  ;;  %v3581_v31 = vpop.f32.mrb[25].mxu0  ;;  %v1560_v27 = vsel %vm53_vm0, %v4429_v16, 0.0 }
 0x6ec   :  { %v1069_v24 = vpop.f32.mrb[32].mxu1  ;;  %v1021_v32 = vpop.f32.mrb[26].mxu0 }
 0x6ed   :  { %v1128_v33 = vmul.f32 0.35355338, %v1069_v24  ;;  %v3587_v34 = vpop.f32.mrb[33].mxu1  ;;  %v3582_v15 = vpop.f32.mrb[27].mxu0  ;;  %v1131_v35 = vsel %vm4257_vm7, %v1127_v5, -1e+09 }
 0x6ee   :  { %v1072_v19 = vpop.f32.mrb[34].mxu1  ;;  %v1137_v12 = vsel %vm265_vm6, %v1131_v35, -inf }
 0x6ef   :  { %v3588_v36 = vpop.f32.mrb[35].mxu1  ;;  %v1132_v29 = vsel %vm4257_vm7, %v1128_v33, -1e+09  ;;  %1138 = vmax.xlane.f32.xlu0 %v1137_v12 }
 0x6f0   :  { %v1140_v37 = vsel %vm265_vm6, %v1132_v29, -inf }
 0x6f2   :  { %v1120_v39 = vpop.f32.mrb[28].mxu0 }
 0x6f3   :  { %v1129_v40 = vmul.f32 0.35355338, %v1120_v39  ;;  %v3593_v3 = vpop.f32.mrb[29].mxu0  ;;  %1141 = vmax.xlane.f32.xlu0 %v1140_v37 }
 0x6f4   :  { %v1123_v41 = vpop.f32.mrb[30].mxu0 }
 0x6f5   :  { %v3594_v43 = vpop.f32.mrb[31].mxu0  ;;  %v1133_v44 = vsel %vm4257_vm7, %v1129_v40, -1e+09 }
 0x6f6   :  { %v1143_v38 = vsel %vm265_vm6, %v1133_v44, -inf }
 0x6f7   :  { %1144 = vmax.xlane.f32.xlu0 %v1143_v38 }
 0x6fa   :  { %1183 = vrot.lane.b32.xlu1 %v1182_v45, %s4071_s18 }
 0x776   :  { %v1136_v47 = vpop.xlane.xlu1 %1135 }
 0x777   :  { %v1146_v48 = vsub.f32 %v1130_v26, %v1136_v47  ;;  %v1231_v26 = vrot.slane %v4305_v30, 4 }
 0x779   :  { %v1150_v50 = vmul.f32 1.442695, %v1146_v48 }
 0x77a   :  { %v1184_v51 = vpop.permute.xlu1 %1183 }
 0x77b   :  { %3967 = vpow2.f32 %v1150_v50  ;;  %v1189_v57 = vsel %vm523_vm8, %v1184_v51, 0 }
 0x77c   :  { %3596 = vmatpush3.bf16.msra.mxu1 %v1189_v57  ;;  %v1139_v53 = vpop.xlane.xlu0 %1138 }
 0x77d   :  { %3607 = vmatprep.subr.bf16.mxu1 %v4064_v17  ;;  %v1147_v59 = vsub.f32 %v1131_v35, %v1139_v53 }
 0x77f   :  { %v1152_v60 = vmul.f32 1.442695, %v1147_v59 }
 0x780   :  { %v1142_v56 = vpop.xlane.xlu0 %1141 }
 0x781   :  { %3969 = vpow2.f32 %v1152_v60  ;;  %v1148_v61 = vsub.f32 %v1132_v29, %v1142_v56 }
 0x783   :  { %v1154_v62 = vmul.f32 1.442695, %v1148_v61 }
 0x784   :  { %v1145_v1 = vpop.xlane.xlu0 %1144 }
 0x785   :  { %v3968_v54 = vpop.eup %3967  ;;  %3971 = vpow2.f32 %v1154_v62  ;;  %v1149_v4 = vsub.f32 %v1133_v44, %v1145_v1 }
 0x786   :  { %v1158_v7 = vsel %vm265_vm6, %v3968_v54, 0.0 }
 0x787   :  { %1159 = vadd.xlane.f32.xlu1 %v1158_v7  ;;  %v1156_v21 = vmul.f32 1.442695, %v1149_v4 }
 0x789   :  { %3973 = vpow2.f32 %v1156_v21 }
 0x78b   :  { %v3970_v9 = vpop.eup %3969 }
 0x78c   :  { %v1161_v10 = vsel %vm265_vm6, %v3970_v9, 0.0 }
 0x78d   :  { %1162 = vadd.xlane.f32.xlu0 %v1161_v10 }
 0x78f   :  { %v3972_v11 = vpop.eup %3971 }
 0x790   :  { %v1164_v28 = vsel %vm265_vm6, %v3972_v11, 0.0 }
 0x791   :  { %1165 = vadd.xlane.f32.xlu1 %v1164_v28 }
 0x793   :  { %v3974_v13 = vpop.eup %3973 }
 0x794   :  { %v1167_v18 = vsel %vm265_vm6, %v3974_v13, 0.0 }
 0x795   :  { %1168 = vadd.xlane.f32.xlu0 %v1167_v18 }
 0x7a2   :  { %1281 = vrot.lane.b32.xlu1 %v1280_v20, %s4071_s18 }
 0x7a6   :  { %1330 = vrot.lane.b32.xlu1 %v1329_v25, %s4071_s18 }
 0x7ab   :  { %1232 = vrot.lane.b32.xlu0 %v1231_v26, %s4071_s18 }
 0x7ca   :  { %1561 = vadd.xlane.f32.xlu1 %v1560_v27 }
 0x814   :  { %v1160_v5 = vpop.xlane.xlu1 %1159 }
 0x815   :  { %3975 = vrcp.f32 %v1160_v5 }
 0x81a   :  { %v1163_v58 = vpop.xlane.xlu0 %1162 }
 0x81b   :  { %3977 = vrcp.f32 %v1163_v58 }
 0x81e   :  { %v1166_v2 = vpop.xlane.xlu1 %1165 }
 0x81f   :  { %v3976_v31 = vpop.eup %3975  ;;  %3979 = vrcp.f32 %v1166_v2 }
 0x820   :  { %v1174_v24 = vmul.f32 %v3976_v31, %v3968_v54 }
 0x822   :  { %v1178_v32 = vpack.c.bf16 %v1174_v24, %v1174_v24  ;;  %v1169_v30 = vpop.xlane.xlu0 %1168  ;;  %v1282_v33 = vpop.permute.xlu1 %1281 }
 0x823   :  { %3981 = vrcp.f32 %v1169_v30  ;;  %v1287_v34 = vsel %vm523_vm8, %v1282_v33, 0 }
 0x824   :  { %3598 = vmatmul.mubr.msk.bf16.vlgmr.msra.gmra.mrb[36].mxu1 %vm265_vm6, %v1178_v32 }
 0x825   :  { %3608 = vmatpush3.bf16.msra.mxu1 %v1287_v34  ;;  %3609 = vmatprep.mubr.msk.bf16.mxu1 %vm4065_vm1, %v4064_v17  ;;  %v3978_v0 = vpop.eup %3977 }
 0x826   :  { %3619 = vmatprep.subr.bf16.mxu1 %v4064_v17  ;;  %v1175_v8 = vmul.f32 %v3978_v0, %v3970_v9  ;;  %v1233_v15 = vpop.permute.xlu0 %1232  ;;  %v1331_v19 = vpop.permute.xlu1 %1330 }
 0x827   :  { %v1238_v35 = vsel %vm523_vm8, %v1233_v15, 0  ;;  %v1336_v37 = vsel %vm523_vm8, %v1331_v19, 0  ;;  %v4488_v19 = vld [vmem:[%s4894_s3] sm:$0xff] }
 0x828   :  { %3602 = vmatpush3.bf16.msra.mxu0 %v1238_v35  ;;  %v1179_v12 = vpack.c.bf16 %v1175_v8, %v1175_v8 }
 0x829   :  { %v3980_v36 = vpop.eup %3979  ;;  %3613 = vmatprep.subr.bf16.mxu0 %v4064_v17 }
 0x82a   :  { %v1176_v29 = vmul.f32 %v3980_v36, %v3972_v11 }
 0x82b   :  { %3604 = vmatmul.mubr.msk.bf16.vlgmr.msra.gmra.mrb[32].mxu0 %vm265_vm6, %v1179_v12  ;;  %v4493_v12 = vld [vmem:[%s4894_s3 + $0x8] sm:$0xff] }
 0x82c   :  { %3614 = vmatpush3.bf16.msra.mxu0 %v1336_v37  ;;  %v1180_v39 = vpack.c.bf16 %v1176_v29, %v1176_v29  ;;  %3615 = vmatprep.mubr.msk.bf16.mxu0 %vm4065_vm1, %v4064_v17  ;;  %v3338_v36 = vcombine.high %v4488_v19, %v4493_v12  ;;  %v4502_v29 = vld [vmem:[%s4894_s3 + $0x10] sm:$0xff]  ;;  %v4507_v37 = vld [vmem:[%s4894_s3 + $0x18] sm:$0xff] }
 0x82d   :  { %v3982_v40 = vpop.eup %3981  ;;  %3625 = vmatprep.subr.bf16.mxu0 %v4064_v17 }
 0x82e   :  { %v1177_v3 = vmul.f32 %v3982_v40, %v3974_v13  ;;  %3610 = vmatmul.mubr.msk.bf16.vlgmr.msra.gmra.mrb[40].mxu1 %vm265_vm6, %v1180_v39  ;;  %1670 = vrot.lane.b32.xlu1 %v3338_v36, %s4068_s13  ;;  %v3339_v39 = vcombine.high %v4502_v29, %v4507_v37 }
 0x82f   :  { %3620 = vmatpush3.bf16.msra.mxu1 %v4329_v52  ;;  %3621 = vmatprep.mubr.msk.bf16.mxu1 %vm4065_vm1, %v4064_v17 }
 0x830   :  { %v1181_v41 = vpack.c.bf16 %v1177_v3, %v1177_v3  ;;  %3631 = vmatprep.subr.bf16.mxu1 %v4064_v17 }
 0x833   :  { %3616 = vmatmul.mubr.msk.bf16.vlgmr.msra.gmra.mrb[36].mxu0 %vm265_vm6, %v1181_v41 }
 0x834   :  { %3626 = vmatpush3.bf16.msra.mxu0 %v4341_v63  ;;  %3627 = vmatprep.mubr.msk.bf16.mxu0 %vm4065_vm1, %v4064_v17 }
 0x835   :  { %3637 = vmatprep.subr.bf16.mxu0 %v4064_v17 }
 0x857   :  { %v1562_v13 = vpop.xlane.xlu1 %1561 }
 0x858   :  { %v1566_v5 = vmul.f32 0.03125, %v1562_v13  ;;  %v1608_v13 = vsub.s32 3, %v4158_v22 }
 0x85a   :  { %v4473_v24 = vsub.f32 %v4429_v16, %v1566_v5 }
 0x85c   :  { %v1570_v15 = vmul.f32 %v4473_v24, %v4473_v24 }
 0x85e   :  { %v1572_v35 = vsel %vm53_vm0, %v1570_v15, 0.0 }
 0x8f7   :  { %v1225_v43 = vpop.f32.mrb[36].mxu1 }
 0x8f8   :  { %v1378_v44 = vpack.c.bf16 %v1225_v43, %v1225_v43  ;;  %v3599_v38 = vpop.f32.mrb[37].mxu1 }
 0x8f9   :  { %v1228_v45 = vpop.f32.mrb[38].mxu1  ;;  %v1671_v38 = vpop.permute.xlu1 %1670 }
 0x8fa   :  { %v3600_v52 = vpop.f32.mrb[39].mxu1  ;;  %3622 = vmatmul.mubr.msk.bf16.vlgmr.msra.gmra.mrb[44].mxu1 %vm265_vm6, %v1378_v44 }
 0x8fb   :  { %3632 = vmatpush3.bf16.msra.mxu1 %v4349_v6  ;;  %3633 = vmatprep.mubr.msk.bf16.mxu1 %vm4065_vm1, %v4064_v17 }
 0x8fc   :  { %3643 = vmatprep.subr.bf16.mxu1 %v4064_v17 }
 0x8fe   :  { %v1274_v63 = vpop.f32.mrb[32].mxu0 }
 0x8ff   :  { %v1423_v47 = vpack.c.bf16 %v1274_v63, %v1274_v63  ;;  %v3605_v48 = vpop.f32.mrb[33].mxu0 }
 0x900   :  { %v1277_v50 = vpop.f32.mrb[34].mxu0 }
 0x901   :  { %v3606_v51 = vpop.f32.mrb[35].mxu0  ;;  %v1323_v57 = vpop.f32.mrb[40].mxu1  ;;  %3628 = vmatmul.mubr.msk.bf16.vlgmr.msra.gmra.mrb[40].mxu0 %vm265_vm6, %v1423_v47 }
 0x902   :  { %v1468_v53 = vpack.c.bf16 %v1323_v57, %v1323_v57  ;;  %3638 = vmatpush3.bf16.msra.mxu0 %v4357_v14  ;;  %v3611_v59 = vpop.f32.mrb[41].mxu1  ;;  %3639 = vmatprep.mubr.msk.bf16.mxu0 %vm4065_vm1, %v4064_v17  ;;  %v27_v51 = vld [vmem:[%s4892_s1] sm:$0xff]  ;;  %v28_v57 = vld [vmem:[%s4892_s1 + $0x8] sm:$0xff] }
 0x903   :  { %v1326_v6 = vpop.f32.mrb[42].mxu1  ;;  %3651 = vmatprep.subr.bf16.mxu0 %v4064_v17 }
 0x904   :  { %v3612_v60 = vpop.f32.mrb[43].mxu1  ;;  %3634 = vmatmul.mubr.msk.bf16.vlgmr.msra.gmra.mrb[48].mxu1 %vm265_vm6, %v1468_v53  ;;  %v1669_v6 = vpack.c.bf16 %v28_v57, %v27_v51 }
 0x905   :  { %3647 = vmatprep.mubr.msk.bf16.mxu1 %vm4065_vm1, %v4064_v17  ;;  %3644 = vmatpush3.bf16.msra.mxu1 %v3338_v36 }
 0x906   :  { %v1372_v56 = vpop.f32.mrb[36].mxu0  ;;  %3645 = vmatprep.subr.bf16.mxu1 %v4064_v17 }
 0x907   :  { %v1513_v61 = vpack.c.bf16 %v1372_v56, %v1372_v56  ;;  %v3617_v62 = vpop.f32.mrb[37].mxu0 }
 0x908   :  { %v1375_v54 = vpop.f32.mrb[38].mxu0 }
 0x909   :  { %v3618_v1 = vpop.f32.mrb[39].mxu0  ;;  %3640 = vmatmul.mubr.msk.bf16.vlgmr.msra.gmra.mrb[44].mxu0 %vm265_vm6, %v1513_v61  ;;  %3646 = vmatpush3.bf16.msra.mxu1 %v3339_v39 }
 0x90a   :  { %3655 = vmatprep.mubr.msk.bf16.mxu0 %vm4065_vm1, %v4064_v17  ;;  %3659 = vmatprep.subr.bf16.mxu1 %v4064_v17 }
 0x90b   :  { %3652 = vmatpush3.bf16.msra.mxu0 %v1671_v38 }
 0x90c   :  { %3653 = vmatprep.subr.bf16.mxu0 %v4064_v17 }
 0x9cd   :  { %v1416_v14 = vpop.f32.mrb[44].mxu1 }
 0x9ce   :  { %v3623_v4 = vpop.f32.mrb[45].mxu1  ;;  %v1422_v9 = vadd.f32 %v1416_v14, %v4396_v49  ;;  %v4031_v49 = vld [vmem:[%s4891_s0 + $0x8] sm:$0xff] }
 0x9cf   :  { %v1419_v7 = vpop.f32.mrb[46].mxu1 }
 0x9d0   :  { %v3624_v21 = vpop.f32.mrb[47].mxu1 }
 0x9d1   :  { %v1602_v21 = vsub.s32 2, %v4158_v22 }
 0x9d4   :  { %v1461_v10 = vpop.f32.mrb[40].mxu0 }
 0x9d5   :  { %v1467_v11 = vadd.f32 %v1461_v10, %v1422_v9  ;;  %v3629_v28 = vpop.f32.mrb[41].mxu0 }
 0x9d6   :  { %v1464_v18 = vpop.f32.mrb[42].mxu0 }
 0x9d7   :  { %v3630_v20 = vpop.f32.mrb[43].mxu0  ;;  %v1506_v25 = vpop.f32.mrb[48].mxu1 }
 0x9d8   :  { %v1512_v26 = vadd.f32 %v1506_v25, %v1467_v11  ;;  %v3635_v27 = vpop.f32.mrb[49].mxu1  ;;  %v4036_v11 = vld [vmem:[%s4896_s5] sm:$0xff] }
 0x9d9   :  { %v1509_v58 = vpop.f32.mrb[50].mxu1  ;;  %v1603_v28 = vrot.slane %v4036_v11, %v1602_v21 }
 0x9da   :  { %v3636_v31 = vpop.f32.mrb[51].mxu1 }
 0x9dc   :  { %v1551_v2 = vpop.f32.mrb[44].mxu0 }
 0x9dd   :  { %v1557_v32 = vadd.f32 %v1551_v2, %v1512_v26  ;;  %v3641_v30 = vpop.f32.mrb[45].mxu0  ;;  %v1609_v26 = vrot.slane %v4036_v11, %v1608_v13  ;;  %v4538_v2 = vld [vmem:[%s4896_s5 + $0x8] sm:$0xff] }
 0x9de   :  { %v1554_v33 = vpop.f32.mrb[46].mxu0 }
 0x9df   :  { %v4478_v34 = vadd.f32 %v4031_v49, %v1557_v32  ;;  %v3642_v0 = vpop.f32.mrb[47].mxu0 }
 0x9e1   :  { %v1563_v8 = vsel %vm53_vm0, %v4478_v34, 0.0 }
 0x9e2   :  { %1564 = vadd.xlane.f32.xlu0 %v1563_v8 }
 0x9e6   :  { %1573 = vadd.xlane.f32.xlu0 %v1572_v35 }
 0xa6f   :  { %v1565_v40 = vpop.xlane.xlu0 %1564 }
 0xa70   :  { %v1567_v3 = vmul.f32 0.03125, %v1565_v40 }
 0xa72   :  { %v1569_v41 = vsub.f32 %v4478_v34, %v1567_v3 }
 0xa73   :  { %v1574_v45 = vpop.xlane.xlu0 %1573 }
 0xa74   :  { %v1571_v43 = vmul.f32 %v1569_v41, %v1569_v41  ;;  %v1578_v52 = vmul.f32 0.032258064, %v1574_v45 }
 0xa76   :  { %v1575_v44 = vsel %vm53_vm0, %v1571_v43, 0.0  ;;  %3983 = vrsqrt.f32 %v1578_v52  ;;  %vm1582_vm9 = vcmp.eq.f32.partialorder %v1578_v52, inf  ;;  %v1585_v60 = vand.u32 2147483648, %v1578_v52 }
 0xa77   :  { %1576 = vadd.xlane.f32.xlu0 %v1575_v44  ;;  %vm1584_vm10 = vcmp.eq.f32.partialorder %v1578_v52, 0.0 }
 0xa80   :  { %v3984_v63 = vpop.eup %3983 }
 0xa81   :  { %v1581_v47 = vmul.f32 %v3984_v63, %v1578_v52  ;;  %v1728_v63 = vsub.s32 4, %v4158_v22 }
 0xa83   :  { %v1583_v53 = vsel %vm1582_vm9, %v1578_v52, %v1581_v47  ;;  %v1729_v47 = vrot.slane %v4538_v2, %v1728_v63 }
 0xa84   :  { %v1586_v56 = vsel %vm1584_vm10, %v1585_v60, %v1583_v53 }
 0xa85   :  { %v1594_v61 = vadd.f32 1e-06, %v1586_v56 }
 0xa8d   :  { %1672 = vrot.lane.b32.xlu0 %v3339_v39, %s4068_s13  ;;  %v1616_v39 = vrot.slane %v4538_v2, %v1602_v21 }
 0xb04   :  { %v1577_v48 = vpop.xlane.xlu0 %1576 }
 0xb05   :  { %v1579_v50 = vmul.f32 0.032258064, %v1577_v48 }
 0xb07   :  { %3985 = vrsqrt.f32 %v1579_v50  ;;  %vm1589_vm11 = vcmp.eq.f32.partialorder %v1579_v50, inf  ;;  %v1592_v1 = vand.u32 2147483648, %v1579_v50  ;;  %vm1591_vm12 = vcmp.eq.f32.partialorder %v1579_v50, 0.0 }
 0xb08   :  { %v1673_v59 = vpop.permute.xlu0 %1672  ;;  %3987 = vrcp.f32 %v1594_v61 }
 0xb09   :  { %3654 = vmatpush3.bf16.msra.mxu0 %v1673_v59 }
 0xb0a   :  { %3665 = vmatprep.subr.bf16.mxu0 %v4064_v17 }
 0xb0c   :  { %3656 = vmatmul.mubr.msk.bf16.vlgmr.msra.gmra.mrb[48].mxu0 %vm53_vm0, %v1669_v6 }
 0xb0d   :  { %3667 = vmatprep.mubr.msk.bf16.mxu0 %vm4065_vm1, %v4064_v17 }
 0xb11   :  { %v3986_v62 = vpop.eup %3985 }
 0xb12   :  { %v1588_v54 = vmul.f32 %v3986_v62, %v1579_v50  ;;  %v3988_v9 = vpop.eup %3987 }
 0xb13   :  { %v1598_v10 = vmul.f32 %v3988_v9, %v4473_v24  ;;  %v1723_v24 = vrot.slane %v4538_v2, %v1608_v13 }
 0xb14   :  { %v1590_v14 = vsel %vm1589_vm11, %v1579_v50, %v1588_v54 }
 0xb15   :  { %v1593_v4 = vsel %vm1591_vm12, %v1592_v1, %v1590_v14  ;;  %v1604_v25 = vmul.f32 %v1603_v28, %v1598_v10 }
 0xb16   :  { %v1595_v7 = vadd.f32 1e-06, %v1593_v4 }
 0xb17   :  { %v1610_v5 = vadd.f32 %v1609_v26, %v1604_v25 }
 0xb18   :  { %3989 = vrcp.f32 %v1595_v7 }
 0xb22   :  { %v3990_v18 = vpop.eup %3989 }
 0xb23   :  { %v1599_v20 = vmul.f32 %v3990_v18, %v1569_v41 }
 0xb25   :  { %v1605_v27 = vmul.f32 %v1603_v28, %v1599_v20 }
 0xb27   :  { %v1611_v58 = vadd.f32 %v1609_v26, %v1605_v27 }
 0xb29   :  { %v1612_v31 = vpack.c.bf16 %v1611_v58, %v1610_v5 }
 0xb2b   :  { %3648 = vmatmul.mubr.msk.bf16.vlgmr.msra.gmra.mrb[52].mxu1 %vm53_vm0, %v1612_v31 }
 0xb2c   :  { %3661 = vmatprep.mubr.msk.bf16.mxu1 %vm4065_vm1, %v4064_v17 }
 0xbdf   :  { %v4541_v32 = vpop.f32.mrb[48].mxu0 }
 0xbe0   :  { %v1724_v30 = vadd.f32 %v1723_v24, %v4541_v32  ;;  %v3657_v33 = vpop.f32.mrb[49].mxu0 }
 0xbe1   :  { %v4544_v49 = vpop.f32.mrb[50].mxu0  ;;  %v4072_v33 = vmov 0  }
 0xbe2   :  { %v1725_v0 = vadd.f32 %v1723_v24, %v4544_v49  ;;  %v3658_v8 = vpop.f32.mrb[51].mxu0 }
 0xbe4   :  { %v3880_v15 = vpack.i.bf16 %v1725_v0, %v1724_v30  ;;  %v4547_v35 = vpack.c.bf16 %v1725_v0, %v1724_v30 }
 0xbe6   :  { %3881 = vrot.lane.b32.xlu1 %v3880_v15, %s4067_s12  ;;  %3896 = vrot.lane.b32.xlu0 %v3880_v15, %s4070_s15  ;;  %v1813_v36 = vsel %vm265_vm6, %v4547_v35, 0 }
 0xbe7   :  { %3660 = vmatpush3.bf16.xpose.msra.mxu1 %v1813_v36 }
 0xbe8   :  { %3671 = vmatprep.subr.bf16.mxu1 %v4064_v17 }
 0xbea   :  { %3886 = vrot.lane.b32.xlu1 %v3880_v15, %s4069_s14 }
 0xbfe   :  { %v1662_v40 = vpop.f32.mrb[52].mxu1 }
 0xbff   :  { %v3649_v3 = vpop.f32.mrb[53].mxu1  ;;  %v1663_v43 = vadd.f32 %v1662_v40, %v1616_v39 }
 0xc00   :  { %v1665_v41 = vpop.f32.mrb[54].mxu1 }
 0xc01   :  { %v1666_v44 = vadd.f32 %v1665_v41, %v1616_v39  ;;  %v3650_v38 = vpop.f32.mrb[55].mxu1 }
 0xc03   :  { %v4556_v45 = vpack.c.bf16 %v1666_v44, %v1663_v43  ;;  %v3905_v52 = vpack.i.bf16 %v1666_v44, %v1663_v43 }
 0xc05   :  { %3906 = vrot.lane.b32.xlu0 %v3905_v52, %s4070_s15  ;;  %3891 = vrot.lane.b32.xlu1 %v3905_v52, %s4067_s12 }
 0xc06   :  { %3662 = vmatmul.mubr.msk.bf16.vlgmr.msra.gmra.mrb[56].mxu1 %vm265_vm6, %v4556_v45 }
 0xc07   :  { %3673 = vmatprep.mubr.msk.bf16.mxu1 %vm4065_vm1, %v4064_v17 }
 0xc09   :  { %3901 = vrot.lane.b32.xlu1 %v3905_v52, %s4069_s14 }
 0xc0d   :  { %1731 = vrot.lane.b32.xlu1 %v1729_v47, %s4066_s11 }
 0xc58   :  { %v3882_v48 = vpop.permute.xlu1 %3881  ;;  %v3897_v62 = vpop.permute.xlu0 %3896 }
 0xc59   :  { %v3884_v50 = vunpack.i.h.bf16 %v3882_v48  ;;  %v3883_v51 = vunpack.i.l.bf16 %v3882_v48  ;;  %v3899_v54 = vunpack.i.h.bf16 %v3897_v62  ;;  %v3898_v1 = vunpack.i.l.bf16 %v3897_v62 }
 0xc5b   :  { %v4570_v57 = vpack.c.bf16 %v3884_v50, %v3883_v51  ;;  %v4580_v4 = vpack.c.bf16 %v3899_v54, %v3898_v1 }
 0xc5c   :  { %v3887_v53 = vpop.permute.xlu1 %3886 }
 0xc5d   :  { %v3889_v59 = vunpack.i.h.bf16 %v3887_v53  ;;  %v3888_v6 = vunpack.i.l.bf16 %v3887_v53  ;;  %v1859_v60 = vsel %vm265_vm6, %v4570_v57, 0  ;;  %v1951_v18 = vsel %vm265_vm6, %v4580_v4, 0 }
 0xc5e   :  { %3666 = vmatpush3.bf16.xpose.msra.mxu0 %v1859_v60 }
 0xc5f   :  { %v4574_v56 = vpack.c.bf16 %v3889_v59, %v3888_v6  ;;  %3677 = vmatprep.subr.bf16.mxu0 %v4064_v17 }
 0xc61   :  { %v1905_v61 = vsel %vm265_vm6, %v4574_v56, 0 }
 0xc62   :  { %3672 = vmatpush3.bf16.xpose.msra.mxu1 %v1905_v61 }
 0xc63   :  { %3683 = vmatprep.subr.bf16.mxu1 %v4064_v17 }
 0xc77   :  { %v3892_v14 = vpop.permute.xlu1 %3891  ;;  %v3907_v9 = vpop.permute.xlu0 %3906 }
 0xc78   :  { %v3894_v7 = vunpack.i.h.bf16 %v3892_v14  ;;  %v3893_v21 = vunpack.i.l.bf16 %v3892_v14  ;;  %v3909_v20 = vunpack.i.h.bf16 %v3907_v9  ;;  %v3908_v25 = vunpack.i.l.bf16 %v3907_v9 }
 0xc7a   :  { %v4582_v10 = vpack.c.bf16 %v3894_v7, %v3893_v21  ;;  %v4597_v31 = vpack.c.bf16 %v3909_v20, %v3908_v25 }
 0xc7b   :  { %v3902_v11 = vpop.permute.xlu1 %3901 }
 0xc7c   :  { %v3904_v28 = vunpack.i.h.bf16 %v3902_v11  ;;  %v3903_v13 = vunpack.i.l.bf16 %v3902_v11  ;;  %3668 = vmatmul.mubr.msk.bf16.vlgmr.msra.gmra.mrb[52].mxu0 %vm265_vm6, %v4582_v10 }
 0xc7d   :  { %3678 = vmatpush3.bf16.xpose.msra.mxu0 %v1951_v18  ;;  %3679 = vmatprep.mubr.msk.bf16.mxu0 %vm4065_vm1, %v4064_v17 }
 0xc7e   :  { %v4590_v26 = vpack.c.bf16 %v3904_v28, %v3903_v13  ;;  %3689 = vmatprep.subr.bf16.mxu0 %v4064_v17 }
 0xc7f   :  { %v1732_v27 = vpop.permute.xlu1 %1731 }
 0xc80   :  { %v1734_v5 = vadd.f32 %v1732_v27, %v4541_v32  ;;  %v1735_v58 = vadd.f32 %v1732_v27, %v4544_v49  ;;  %3674 = vmatmul.mubr.msk.bf16.vlgmr.msra.gmra.mrb[60].mxu1 %vm265_vm6, %v4590_v26  ;;  %v29_v32 = vld [vmem:[%s4893_s2] sm:$0x3] }
 0xc81   :  { %3685 = vmatprep.mubr.msk.bf16.mxu1 %vm4065_vm1, %v4064_v17  ;;  %vm1736_vm13 = vcmp.ne.f32.partialorder %v29_v32, 0.0 }
 0xc82   :  { %v3915_v24 = vpack.i.bf16 %v1735_v58, %v1734_v5  ;;  %v4601_v30 = vpack.c.bf16 %v1735_v58, %v1734_v5  ;;  %v4610_v49 = vsel %vm1736_vm13, 1, %v4072_v33 }
 0xc83   :  { %v2001_v0 = vrot.slane %v4610_v49, %v4168_v42 }
 0xc84   :  { %3680 = vmatmul.mubr.msk.bf16.vlgmr.msra.gmra.mrb[56].mxu0 %vm265_vm6, %v4597_v31 }
 0xc85   :  { %3691 = vmatprep.mubr.msk.bf16.mxu0 %vm4065_vm1, %v4064_v17  ;;  %vm4614_vm14 = vcmp.eq.s32.totalorder %v2001_v0, 1 }
 0xcd9   :  { %v1849_v8 = vpop.f32.mrb[56].mxu1 }
 0xcda   :  { %v1993_v36 = vmul.f32 0.35355338, %v1849_v8  ;;  %v3663_v39 = vpop.f32.mrb[57].mxu1 }
 0xcdb   :  { %v1852_v40 = vpop.f32.mrb[58].mxu1 }
 0xcdc   :  { %v3664_v3 = vpop.f32.mrb[59].mxu1  ;;  %v2003_v41 = vsel %vm4614_vm14, %v1993_v36, -1e+09 }
 0xcdd   :  { %v2007_v43 = vsel %vm265_vm6, %v2003_v41, -inf }
 0xcde   :  { %2008 = vmax.xlane.f32.xlu0 %v2007_v43 }
 0xd4f   :  { %v1895_v44 = vpop.f32.mrb[52].mxu0 }
 0xd50   :  { %v1994_v38 = vmul.f32 0.35355338, %v1895_v44  ;;  %v3669_v52 = vpop.f32.mrb[53].mxu0 }
 0xd51   :  { %v1898_v47 = vpop.f32.mrb[54].mxu0 }
 0xd52   :  { %v3670_v42 = vpop.f32.mrb[55].mxu0  ;;  %v2004_v48 = vsel %vm4614_vm14, %v1994_v38, -1e+09 }
 0xd53   :  { %v1941_v50 = vpop.f32.mrb[60].mxu1  ;;  %v2010_v51 = vsel %vm265_vm6, %v2004_v48, -inf }
 0xd54   :  { %v1995_v53 = vmul.f32 0.35355338, %v1941_v50  ;;  %v3675_v59 = vpop.f32.mrb[61].mxu1  ;;  %2011 = vmax.xlane.f32.xlu1 %v2010_v51 }
 0xd55   :  { %v1944_v6 = vpop.f32.mrb[62].mxu1 }
 0xd56   :  { %v3676_v60 = vpop.f32.mrb[63].mxu1  ;;  %v2005_v61 = vsel %vm4614_vm14, %v1995_v53, -1e+09 }
 0xd57   :  { %v1987_v62 = vpop.f32.mrb[56].mxu0  ;;  %v2013_v54 = vsel %vm265_vm6, %v2005_v61, -inf }
 0xd58   :  { %v1996_v1 = vmul.f32 0.35355338, %v1987_v62  ;;  %2014 = vmax.xlane.f32.xlu0 %v2013_v54  ;;  %v3681_v14 = vpop.f32.mrb[57].mxu0  ;;  %v3350_v62 = vcombine.high %v4488_v19, %v4488_v19  ;;  %v3356_v19 = vcombine.high %v4507_v37, %v4507_v37 }
 0xd59   :  { %v1990_v7 = vpop.f32.mrb[58].mxu0  ;;  %v3352_v14 = vcombine.high %v4493_v12, %v4493_v12 }
 0xd5a   :  { %v3682_v21 = vpop.f32.mrb[59].mxu0  ;;  %v2006_v9 = vsel %vm4614_vm14, %v1996_v1, -1e+09  ;;  %v3354_v1 = vcombine.high %v4502_v29, %v4502_v29 }
 0xd5b   :  { %v2016_v11 = vsel %vm265_vm6, %v2006_v9, -inf }
 0xd5c   :  { %2017 = vmax.xlane.f32.xlu0 %v2016_v11 }
 0xd65   :  { %3916 = vrot.lane.b32.xlu1 %v3915_v24, %s4069_s14 }
 0xd69   :  { %3921 = vrot.lane.b32.xlu1 %v3915_v24, %s4070_s15 }
 0xd6b   :  { %v2009_v28 = vpop.xlane.xlu0 %2008 }
 0xd6c   :  { %v2019_v13 = vsub.f32 %v2003_v41, %v2009_v28 }
 0xd6d   :  { %2056 = vrot.lane.b32.xlu1 %v4601_v30, %s4068_s13 }
 0xd6e   :  { %v2023_v18 = vmul.f32 1.442695, %v2019_v13 }
 0xd70   :  { %3991 = vpow2.f32 %v2023_v18 }
 0xd72   :  { %3911 = vrot.lane.b32.xlu0 %v3915_v24, %s4067_s12 }
 0xd7a   :  { %v3992_v20 = vpop.eup %3991 }
 0xd7b   :  { %v2031_v25 = vsel %vm265_vm6, %v3992_v20, 0.0 }
 0xd91   :  { %2032 = vadd.xlane.f32.xlu1 %v2031_v25 }
 0xde1   :  { %v2012_v27 = vpop.xlane.xlu1 %2011 }
 0xde2   :  { %v2020_v5 = vsub.f32 %v2004_v48, %v2012_v27 }
 0xde4   :  { %v2025_v58 = vmul.f32 1.442695, %v2020_v5 }
 0xde5   :  { %v2015_v32 = vpop.xlane.xlu0 %2014  ;;  %v3917_v33 = vpop.permute.xlu1 %3916 }
 0xde6   :  { %3993 = vpow2.f32 %v2025_v58  ;;  %v2021_v0 = vsub.f32 %v2005_v61, %v2015_v32  ;;  %v3919_v8 = vunpack.i.h.bf16 %v3917_v33  ;;  %v3918_v15 = vunpack.i.l.bf16 %v3917_v33 }
 0xde8   :  { %v2027_v36 = vmul.f32 1.442695, %v2021_v0  ;;  %v4636_v39 = vpack.c.bf16 %v3919_v8, %v3918_v15 }
 0xde9   :  { %v3922_v24 = vpop.permute.xlu1 %3921  ;;  %v2018_v40 = vpop.xlane.xlu0 %2017 }
 0xdea   :  { %3995 = vpow2.f32 %v2027_v36  ;;  %v3924_v3 = vunpack.i.h.bf16 %v3922_v24  ;;  %v3923_v41 = vunpack.i.l.bf16 %v3922_v24  ;;  %v2022_v43 = vsub.f32 %v2006_v9, %v2018_v40  ;;  %2154 = vrot.lane.b32.xlu1 %v4636_v39, %s4068_s13 }
 0xdec   :  { %v4640_v44 = vpack.c.bf16 %v3924_v3, %v3923_v41  ;;  %v2029_v38 = vmul.f32 1.442695, %v2022_v43 }
 0xded   :  { %v2057_v52 = vpop.permute.xlu1 %2056  ;;  %v3912_v6 = vpop.permute.xlu0 %3911 }
 0xdee   :  { %3997 = vpow2.f32 %v2029_v38  ;;  %v2062_v47 = vsel %vm523_vm8, %v2057_v52, 0  ;;  %2203 = vrot.lane.b32.xlu1 %v4640_v44, %s4068_s13  ;;  %v3914_v60 = vunpack.i.h.bf16 %v3912_v6  ;;  %v3913_v61 = vunpack.i.l.bf16 %v3912_v6 }
 0xdef   :  { %3684 = vmatpush3.bf16.msra.mxu1 %v2062_v47 }
 0xdf0   :  { %v3994_v42 = vpop.eup %3993  ;;  %3695 = vmatprep.subr.bf16.mxu1 %v4064_v17  ;;  %v4651_v54 = vpack.c.bf16 %v3914_v60, %v3913_v61 }
 0xdf1   :  { %v2034_v48 = vsel %vm265_vm6, %v3994_v42, 0.0 }
 0xdf2   :  { %2035 = vadd.xlane.f32.xlu0 %v2034_v48  ;;  %2253 = vrot.lane.b32.xlu1 %v3350_v62, %s4066_s11 }
 0xdf4   :  { %v3996_v50 = vpop.eup %3995 }
 0xdf5   :  { %v2037_v51 = vsel %vm265_vm6, %v3996_v50, 0.0 }
 0xdf6   :  { %2038 = vadd.xlane.f32.xlu0 %v2037_v51  ;;  %2359 = vrot.lane.b32.xlu1 %v3354_v1, %s4066_s11  ;;  %v2462_v1 = vrot.slane %v4547_v35, 4 }
 0xdf8   :  { %v3998_v53 = vpop.eup %3997 }
 0xdf9   :  { %v2040_v59 = vsel %vm265_vm6, %v3998_v53, 0.0 }
 0xdfa   :  { %2041 = vadd.xlane.f32.xlu0 %v2040_v59 }
 0xe10   :  { %2105 = vrot.lane.b32.xlu0 %v4651_v54, %s4068_s13 }
 0xe14   :  { %2308 = vrot.lane.b32.xlu0 %v3352_v14, %s4066_s11 }
 0xe18   :  { %2410 = vrot.lane.b32.xlu0 %v3356_v19, %s4066_s11 }
 0xe1e   :  { %v2033_v7 = vpop.xlane.xlu1 %2032 }
 0xe1f   :  { %3999 = vrcp.f32 %v2033_v7 }
 0xe29   :  { %v4000_v21 = vpop.eup %3999 }
 0xe2a   :  { %v2047_v9 = vmul.f32 %v4000_v21, %v3992_v20 }
 0xe2c   :  { %v2051_v11 = vpack.c.bf16 %v2047_v9, %v2047_v9 }
 0xe2e   :  { %3686 = vmatmul.mubr.msk.bf16.vlgmr.msra.gmra.mrb[64].mxu1 %vm265_vm6, %v2051_v11 }
 0xe2f   :  { %3697 = vmatprep.mubr.msk.bf16.mxu1 %vm4065_vm1, %v4064_v17 }
 0xe5c   :  { %v2155_v12 = vpop.permute.xlu1 %2154 }
 0xe5d   :  { %v2160_v29 = vsel %vm523_vm8, %v2155_v12, 0  ;;  %v2467_v12 = vsel %vm265_vm6, %v2462_v1, 0 }
 0xe5e   :  { %3696 = vmatpush3.bf16.msra.mxu1 %v2160_v29  ;;  %v2512_v29 = vrot.slane %v4570_v57, 4 }
 0xe5f   :  { %3707 = vmatprep.subr.bf16.mxu1 %v4064_v17 }
 0xe60   :  { %v2204_v20 = vpop.permute.xlu1 %2203 }
 0xe61   :  { %v2209_v8 = vsel %vm523_vm8, %v2204_v20, 0 }
 0xe64   :  { %v2254_v33 = vpop.permute.xlu1 %2253 }
 0xe65   :  { %v4677_v36 = vsel %vm523_vm8, %v2254_v33, 0 }
 0xe68   :  { %v2360_v38 = vpop.permute.xlu1 %2359 }
 0xe69   :  { %v4694_v48 = vsel %vm523_vm8, %v2360_v38, 0 }
 0xe7f   :  { %v2036_v28 = vpop.xlane.xlu0 %2035 }
 0xe80   :  { %4001 = vrcp.f32 %v2036_v28 }
 0xe83   :  { %v2039_v37 = vpop.xlane.xlu0 %2038 }
 0xe84   :  { %4003 = vrcp.f32 %v2039_v37 }
 0xe87   :  { %v2042_v13 = vpop.xlane.xlu0 %2041 }
 0xe88   :  { %4005 = vrcp.f32 %v2042_v13 }
 0xe8a   :  { %v4002_v18 = vpop.eup %4001 }
 0xe8b   :  { %v2048_v25 = vmul.f32 %v4002_v18, %v3994_v42  ;;  %v2106_v27 = vpop.permute.xlu0 %2105  ;;  %v2562_v18 = vrot.slane %v4574_v56, 4  ;;  %v2612_v56 = vrot.slane %v4580_v4, 4  ;;  %v2610_v4 = vrot.slane %v4597_v31, 4 }
 0xe8c   :  { %v2111_v5 = vsel %vm523_vm8, %v2106_v27, 0  ;;  %v2517_v27 = vsel %vm265_vm6, %v2512_v29, 0 }
 0xe8d   :  { %3690 = vmatpush3.bf16.msra.mxu0 %v2111_v5  ;;  %v2052_v58 = vpack.c.bf16 %v2048_v25, %v2048_v25  ;;  %v2460_v25 = vrot.slane %v4556_v45, 4  ;;  %v2567_v57 = vsel %vm265_vm6, %v2562_v18, 0  ;;  %v2510_v45 = vrot.slane %v4582_v10, 4 }
 0xe8e   :  { %v4004_v32 = vpop.eup %4003  ;;  %3701 = vmatprep.subr.bf16.mxu0 %v4064_v17  ;;  %v2560_v5 = vrot.slane %v4590_v26, 4 }
 0xe8f   :  { %v2049_v0 = vmul.f32 %v4004_v32, %v3996_v50  ;;  %v2309_v3 = vpop.permute.xlu0 %2308 }
 0xe90   :  { %3692 = vmatmul.mubr.msk.bf16.vlgmr.msra.gmra.mrb[60].mxu0 %vm265_vm6, %v2052_v58  ;;  %v4686_v43 = vsel %vm523_vm8, %v2309_v3, 0  ;;  %v2617_v58 = vsel %vm265_vm6, %v2612_v56, 0 }
 0xe91   :  { %3702 = vmatpush3.bf16.msra.mxu0 %v2209_v8  ;;  %v2053_v15 = vpack.c.bf16 %v2049_v0, %v2049_v0  ;;  %3703 = vmatprep.mubr.msk.bf16.mxu0 %vm4065_vm1, %v4064_v17  ;;  %v2303_v0 = vsub.s32 5, %v4158_v22 }
 0xe92   :  { %v4006_v24 = vpop.eup %4005  ;;  %3713 = vmatprep.subr.bf16.mxu0 %v4064_v17 }
 0xe93   :  { %v2050_v40 = vmul.f32 %v4006_v24, %v3998_v53  ;;  %3698 = vmatmul.mubr.msk.bf16.vlgmr.msra.gmra.mrb[68].mxu1 %vm265_vm6, %v2053_v15  ;;  %v2411_v53 = vpop.permute.xlu0 %2410  ;;  %v4747_v8 = vrot.slane %v4538_v2, %v2303_v0 }
 0xe94   :  { %3708 = vmatpush3.bf16.msra.mxu1 %v4677_v36  ;;  %3709 = vmatprep.mubr.msk.bf16.mxu1 %vm4065_vm1, %v4064_v17  ;;  %v4702_v60 = vsel %vm523_vm8, %v2411_v53, 0 }
 0xe95   :  { %v2054_v41 = vpack.c.bf16 %v2050_v40, %v2050_v40  ;;  %3719 = vmatprep.subr.bf16.mxu1 %v4064_v17 }
 0xe98   :  { %3704 = vmatmul.mubr.msk.bf16.vlgmr.msra.gmra.mrb[64].mxu0 %vm265_vm6, %v2054_v41 }
 0xe99   :  { %3714 = vmatpush3.bf16.msra.mxu0 %v4686_v43  ;;  %3715 = vmatprep.mubr.msk.bf16.mxu0 %vm4065_vm1, %v4064_v17 }
 0xe9a   :  { %3725 = vmatprep.subr.bf16.mxu0 %v4064_v17 }
 0xf01   :  { %v2098_v52 = vpop.f32.mrb[64].mxu1 }
 0xf02   :  { %v2251_v47 = vpack.c.bf16 %v2098_v52, %v2098_v52  ;;  %v3687_v42 = vpop.f32.mrb[65].mxu1 }
 0xf03   :  { %v2101_v50 = vpop.f32.mrb[66].mxu1 }
 0xf04   :  { %v3688_v51 = vpop.f32.mrb[67].mxu1  ;;  %3710 = vmatmul.mubr.msk.bf16.vlgmr.msra.gmra.mrb[72].mxu1 %vm265_vm6, %v2251_v47 }
 0xf05   :  { %3720 = vmatpush3.bf16.msra.mxu1 %v4694_v48  ;;  %3721 = vmatprep.mubr.msk.bf16.mxu1 %vm4065_vm1, %v4064_v17  ;;  %v2666_v51 = vrot.slane %v4610_v49, %v4172_v46 }
 0xf06   :  { %3731 = vmatprep.subr.bf16.mxu1 %v4064_v17 }
 0xf07   :  { %vm4754_vm15 = vcmp.eq.s32.totalorder %v2666_v51, 1 }
 0xf63   :  { %v2147_v59 = vpop.f32.mrb[60].mxu0 }
 0xf64   :  { %v2306_v6 = vpack.c.bf16 %v2147_v59, %v2147_v59  ;;  %v3693_v61 = vpop.f32.mrb[61].mxu0 }
 0xf65   :  { %v2150_v62 = vpop.f32.mrb[62].mxu0 }
 0xf66   :  { %v3694_v14 = vpop.f32.mrb[63].mxu0  ;;  %v2196_v19 = vpop.f32.mrb[68].mxu1  ;;  %3716 = vmatmul.mubr.msk.bf16.vlgmr.msra.gmra.mrb[68].mxu0 %vm265_vm6, %v2306_v6 }
 0xf67   :  { %v2357_v7 = vpack.c.bf16 %v2196_v19, %v2196_v19  ;;  %3726 = vmatpush3.bf16.msra.mxu0 %v4702_v60  ;;  %v3699_v21 = vpop.f32.mrb[69].mxu1  ;;  %3727 = vmatprep.mubr.msk.bf16.mxu0 %vm4065_vm1, %v4064_v17 }
 0xf68   :  { %v2199_v9 = vpop.f32.mrb[70].mxu1  ;;  %3737 = vmatprep.subr.bf16.mxu0 %v4064_v17 }
 0xf69   :  { %v3700_v11 = vpop.f32.mrb[71].mxu1  ;;  %3722 = vmatmul.mubr.msk.bf16.vlgmr.msra.gmra.mrb[76].mxu1 %vm265_vm6, %v2357_v7 }
 0xf6a   :  { %3732 = vmatpush3.bf16.xpose.msra.mxu1 %v2467_v12  ;;  %3733 = vmatprep.mubr.msk.bf16.mxu1 %vm4065_vm1, %v4064_v17 }
 0xf6b   :  { %v2245_v35 = vpop.f32.mrb[64].mxu0  ;;  %3743 = vmatprep.subr.bf16.mxu1 %v4064_v17 }
 0xf6c   :  { %v2408_v28 = vpack.c.bf16 %v2245_v35, %v2245_v35  ;;  %v3705_v37 = vpop.f32.mrb[65].mxu0 }
 0xf6d   :  { %v2248_v13 = vpop.f32.mrb[66].mxu0 }
 0xf6e   :  { %v3706_v20 = vpop.f32.mrb[67].mxu0  ;;  %3728 = vmatmul.mubr.msk.bf16.vlgmr.msra.gmra.mrb[72].mxu0 %vm265_vm6, %v2408_v28 }
 0xf6f   :  { %3739 = vmatprep.mubr.msk.bf16.mxu0 %vm4065_vm1, %v4064_v17 }
 0xf70   :  { %3738 = vmatpush3.bf16.xpose.msra.mxu0 %v2517_v27 }
 0xf71   :  { %3734 = vmatmul.mubr.msk.bf16.vlgmr.msra.gmra.mrb[80].mxu1 %vm265_vm6, %v2460_v25  ;;  %3749 = vmatprep.subr.bf16.mxu0 %v4064_v17 }
 0xf72   :  { %3744 = vmatpush3.bf16.xpose.msra.mxu1 %v2567_v57  ;;  %3745 = vmatprep.mubr.msk.bf16.mxu1 %vm4065_vm1, %v4064_v17 }
 0xf73   :  { %3755 = vmatprep.subr.bf16.mxu1 %v4064_v17 }
 0xf77   :  { %3740 = vmatmul.mubr.msk.bf16.vlgmr.msra.gmra.mrb[76].mxu0 %vm265_vm6, %v2510_v45 }
 0xf78   :  { %3750 = vmatpush3.bf16.xpose.msra.mxu0 %v2617_v58  ;;  %3751 = vmatprep.mubr.msk.bf16.mxu0 %vm4065_vm1, %v4064_v17 }
 0xf79   :  { %3746 = vmatmul.mubr.msk.bf16.vlgmr.msra.gmra.mrb[84].mxu1 %vm265_vm6, %v2560_v5  ;;  %3761 = vmatprep.subr.bf16.mxu0 %v4064_v17 }
 0xf7a   :  { %3757 = vmatprep.mubr.msk.bf16.mxu1 %vm4065_vm1, %v4064_v17 }
 0xf7f   :  { %3752 = vmatmul.mubr.msk.bf16.vlgmr.msra.gmra.mrb[80].mxu0 %vm265_vm6, %v2610_v4 }
 0xf80   :  { %3763 = vmatprep.mubr.msk.bf16.mxu0 %vm4065_vm1, %v4064_v17 }
 0xfd7   :  { %v2295_v10 = vpop.f32.mrb[72].mxu1 }
 0xfd8   :  { %v3711_v26 = vpop.f32.mrb[73].mxu1  ;;  %v2305_v15 = vadd.f32 %v4747_v8, %v2295_v10 }
 0xfd9   :  { %v2298_v32 = vpop.f32.mrb[74].mxu1 }
 0xfda   :  { %v3712_v33 = vpop.f32.mrb[75].mxu1 }
 0xfdb   :  { %v2720_v33 = vrot.slane %v4601_v30, 4 }
0x1039   :  { %v2350_v24 = vpop.f32.mrb[68].mxu0 }
0x103a   :  { %v2356_v31 = vadd.f32 %v2350_v24, %v2305_v15  ;;  %v3717_v40 = vpop.f32.mrb[69].mxu0 }
0x103b   :  { %v2353_v3 = vpop.f32.mrb[70].mxu0 }
0x103c   :  { %v3718_v41 = vpop.f32.mrb[71].mxu0  ;;  %v2401_v38 = vpop.f32.mrb[76].mxu1 }
0x103d   :  { %v2407_v52 = vadd.f32 %v2401_v38, %v2356_v31  ;;  %v3723_v47 = vpop.f32.mrb[77].mxu1 }
0x103e   :  { %v2404_v42 = vpop.f32.mrb[78].mxu1 }
0x103f   :  { %v3724_v50 = vpop.f32.mrb[79].mxu1 }
0x1041   :  { %v2452_v53 = vpop.f32.mrb[72].mxu0 }
0x1042   :  { %v4752_v59 = vadd.f32 %v2452_v53, %v2407_v52  ;;  %v3729_v2 = vpop.f32.mrb[73].mxu0 }
0x1043   :  { %v2455_v6 = vpop.f32.mrb[74].mxu0 }
0x1044   :  { %v3730_v61 = vpop.f32.mrb[75].mxu0  ;;  %v2503_v62 = vpop.f32.mrb[80].mxu1 }
0x1045   :  { %v2659_v14 = vmul.f32 0.35355338, %v2503_v62  ;;  %v3735_v19 = vpop.f32.mrb[81].mxu1 }
0x1046   :  { %v2506_v7 = vpop.f32.mrb[82].mxu1 }
0x1047   :  { %v3736_v21 = vpop.f32.mrb[83].mxu1  ;;  %v2668_v9 = vsel %vm4754_vm15, %v2659_v14, -1e+09 }
0x1048   :  { %v2672_v46 = vsel %vm265_vm6, %v2668_v9, -inf  ;;  %v2818_v21 = vrot.slane %v4636_v39, 4 }
0x1049   :  { %2673 = vmax.xlane.f32.xlu1 %v2672_v46  ;;  %v2769_v46 = vrot.slane %v4651_v54, 4 }
0x104a   :  { %v2553_v49 = vpop.f32.mrb[76].mxu0 }
0x104b   :  { %v2660_v11 = vmul.f32 0.35355338, %v2553_v49  ;;  %v3741_v12 = vpop.f32.mrb[77].mxu0  ;;  %v4786_v49 = vadd.f32 %v4752_v59, %v4429_v16 }
0x104c   :  { %v2556_v35 = vpop.f32.mrb[78].mxu0  ;;  %v2603_v29 = vpop.f32.mrb[84].mxu1 }
0x104d   :  { %v3742_v28 = vpop.f32.mrb[79].mxu0  ;;  %v2661_v37 = vmul.f32 0.35355338, %v2603_v29  ;;  %v3747_v13 = vpop.f32.mrb[85].mxu1  ;;  %v2669_v18 = vsel %vm4754_vm15, %v2660_v11, -1e+09 }
0x104e   :  { %v2606_v20 = vpop.f32.mrb[86].mxu1  ;;  %v2675_v25 = vsel %vm265_vm6, %v2669_v18, -inf  ;;  %v3098_v11 = vsel %vm53_vm0, %v4786_v49, 0.0 }
0x104f   :  { %2676 = vmax.xlane.f32.xlu0 %v2675_v25  ;;  %v3748_v27 = vpop.f32.mrb[87].mxu1  ;;  %v2670_v57 = vsel %vm4754_vm15, %v2661_v37, -1e+09 }
0x1050   :  { %v2678_v56 = vsel %vm265_vm6, %v2670_v57, -inf }
0x1052   :  { %v2653_v45 = vpop.f32.mrb[80].mxu0 }
0x1053   :  { %v2662_v5 = vmul.f32 0.35355338, %v2653_v45  ;;  %2679 = vmax.xlane.f32.xlu0 %v2678_v56  ;;  %v3753_v58 = vpop.f32.mrb[81].mxu0 }
0x1054   :  { %v2656_v4 = vpop.f32.mrb[82].mxu0 }
0x1055   :  { %v3754_v10 = vpop.f32.mrb[83].mxu0  ;;  %v2671_v26 = vsel %vm4754_vm15, %v2662_v5, -1e+09 }
0x1056   :  { %v2681_v32 = vsel %vm265_vm6, %v2671_v26, -inf }
0x1057   :  { %2682 = vmax.xlane.f32.xlu0 %v2681_v32 }
0x105a   :  { %2721 = vrot.lane.b32.xlu1 %v2720_v33, %s4068_s13 }
0x10d6   :  { %v2674_v15 = vpop.xlane.xlu1 %2673 }
0x10d7   :  { %v2684_v24 = vsub.f32 %v2668_v9, %v2674_v15  ;;  %v2867_v9 = vrot.slane %v4640_v44, 4 }
0x10d9   :  { %v2688_v31 = vmul.f32 1.442695, %v2684_v24 }
0x10da   :  { %v2722_v40 = vpop.permute.xlu1 %2721 }
0x10db   :  { %4007 = vpow2.f32 %v2688_v31  ;;  %v2727_v3 = vsel %vm523_vm8, %v2722_v40, 0 }
0x10dc   :  { %v2677_v41 = vpop.xlane.xlu0 %2676  ;;  %3756 = vmatpush3.bf16.msra.mxu1 %v2727_v3 }
0x10dd   :  { %v2685_v38 = vsub.f32 %v2669_v18, %v2677_v41  ;;  %3767 = vmatprep.subr.bf16.mxu1 %v4064_v17 }
0x10df   :  { %v2690_v52 = vmul.f32 1.442695, %v2685_v38 }
0x10e0   :  { %v2680_v47 = vpop.xlane.xlu0 %2679 }
0x10e1   :  { %4009 = vpow2.f32 %v2690_v52  ;;  %v2686_v42 = vsub.f32 %v2670_v57, %v2680_v47 }
0x10e3   :  { %v2692_v50 = vmul.f32 1.442695, %v2686_v42 }
0x10e4   :  { %v2683_v30 = vpop.xlane.xlu0 %2682 }
0x10e5   :  { %v4008_v51 = vpop.eup %4007  ;;  %4011 = vpow2.f32 %v2692_v50  ;;  %v2687_v53 = vsub.f32 %v2671_v26, %v2683_v30 }
0x10e6   :  { %v2696_v2 = vsel %vm265_vm6, %v4008_v51, 0.0 }
0x10e7   :  { %v2694_v6 = vmul.f32 1.442695, %v2687_v53  ;;  %2697 = vadd.xlane.f32.xlu1 %v2696_v2 }
0x10e9   :  { %4013 = vpow2.f32 %v2694_v6 }
0x10eb   :  { %v4010_v61 = vpop.eup %4009 }
0x10ec   :  { %v2699_v62 = vsel %vm265_vm6, %v4010_v61, 0.0 }
0x10ed   :  { %2700 = vadd.xlane.f32.xlu0 %v2699_v62 }
0x10ef   :  { %v4012_v1 = vpop.eup %4011 }
0x10f0   :  { %v2702_v14 = vsel %vm265_vm6, %v4012_v1, 0.0 }
0x10f1   :  { %2703 = vadd.xlane.f32.xlu1 %v2702_v14 }
0x10f3   :  { %v4014_v19 = vpop.eup %4013 }
0x10f4   :  { %v2705_v7 = vsel %vm265_vm6, %v4014_v19, 0.0 }
0x10f5   :  { %2706 = vadd.xlane.f32.xlu0 %v2705_v7 }
0x1102   :  { %2819 = vrot.lane.b32.xlu1 %v2818_v21, %s4068_s13 }
0x1106   :  { %2868 = vrot.lane.b32.xlu1 %v2867_v9, %s4068_s13 }
0x110b   :  { %2770 = vrot.lane.b32.xlu0 %v2769_v46, %s4068_s13 }
0x112a   :  { %3099 = vadd.xlane.f32.xlu1 %v3098_v11 }
0x1174   :  { %v2698_v12 = vpop.xlane.xlu1 %2697 }
0x1175   :  { %4015 = vrcp.f32 %v2698_v12 }
0x117a   :  { %v2701_v39 = vpop.xlane.xlu0 %2700 }
0x117b   :  { %4017 = vrcp.f32 %v2701_v39 }
0x117e   :  { %v2704_v35 = vpop.xlane.xlu1 %2703 }
0x117f   :  { %v4016_v44 = vpop.eup %4015  ;;  %4019 = vrcp.f32 %v2704_v35 }
0x1180   :  { %v2712_v29 = vmul.f32 %v4016_v44, %v4008_v51 }
0x1182   :  { %v2820_v28 = vpop.permute.xlu1 %2819  ;;  %v2707_v54 = vpop.xlane.xlu0 %2706  ;;  %v2716_v37 = vpack.c.bf16 %v2712_v29, %v2712_v29 }
0x1183   :  { %v2825_v13 = vsel %vm523_vm8, %v2820_v28, 0  ;;  %4021 = vrcp.f32 %v2707_v54 }
0x1184   :  { %3758 = vmatmul.mubr.msk.bf16.vlgmr.msra.gmra.mrb[88].mxu1 %vm265_vm6, %v2716_v37 }
0x1185   :  { %v4018_v16 = vpop.eup %4017  ;;  %3768 = vmatpush3.bf16.msra.mxu1 %v2825_v13  ;;  %3769 = vmatprep.mubr.msk.bf16.mxu1 %vm4065_vm1, %v4064_v17 }
0x1186   :  { %v2713_v59 = vmul.f32 %v4018_v16, %v4010_v61  ;;  %v2771_v18 = vpop.permute.xlu0 %2770  ;;  %3779 = vmatprep.subr.bf16.mxu1 %v4064_v17  ;;  %v2869_v25 = vpop.permute.xlu1 %2868 }
0x1187   :  { %v2776_v20 = vsel %vm523_vm8, %v2771_v18, 0  ;;  %v2874_v45 = vsel %vm523_vm8, %v2869_v25, 0 }
0x1188   :  { %3762 = vmatpush3.bf16.msra.mxu0 %v2776_v20  ;;  %v2717_v27 = vpack.c.bf16 %v2713_v59, %v2713_v59 }
0x1189   :  { %v4020_v57 = vpop.eup %4019  ;;  %3773 = vmatprep.subr.bf16.mxu0 %v4064_v17 }
0x118a   :  { %v2714_v56 = vmul.f32 %v4020_v57, %v4012_v1 }
0x118b   :  { %3764 = vmatmul.mubr.msk.bf16.vlgmr.msra.gmra.mrb[84].mxu0 %vm265_vm6, %v2717_v27 }
0x118c   :  { %3774 = vmatpush3.bf16.msra.mxu0 %v2874_v45  ;;  %v2718_v5 = vpack.c.bf16 %v2714_v56, %v2714_v56  ;;  %3775 = vmatprep.mubr.msk.bf16.mxu0 %vm4065_vm1, %v4064_v17 }
0x118d   :  { %v4022_v58 = vpop.eup %4021  ;;  %3785 = vmatprep.subr.bf16.mxu0 %v4064_v17 }
0x118e   :  { %v2715_v4 = vmul.f32 %v4022_v58, %v4014_v19  ;;  %3770 = vmatmul.mubr.msk.bf16.vlgmr.msra.gmra.mrb[92].mxu1 %vm265_vm6, %v2718_v5 }
0x118f   :  { %3780 = vmatpush3.bf16.msra.mxu1 %v4677_v36  ;;  %3781 = vmatprep.mubr.msk.bf16.mxu1 %vm4065_vm1, %v4064_v17 }
0x1190   :  { %v2719_v10 = vpack.c.bf16 %v2715_v4, %v2715_v4  ;;  %3791 = vmatprep.subr.bf16.mxu1 %v4064_v17 }
0x1193   :  { %3776 = vmatmul.mubr.msk.bf16.vlgmr.msra.gmra.mrb[88].mxu0 %vm265_vm6, %v2719_v10 }
0x1194   :  { %3786 = vmatpush3.bf16.msra.mxu0 %v4686_v43  ;;  %3787 = vmatprep.mubr.msk.bf16.mxu0 %vm4065_vm1, %v4064_v17 }
0x1195   :  { %3797 = vmatprep.subr.bf16.mxu0 %v4064_v17 }
0x11b7   :  { %v3100_v7 = vpop.xlane.xlu1 %3099 }
0x11b8   :  { %v3104_v39 = vmul.f32 0.03125, %v3100_v7 }
0x11ba   :  { %v3106_v28 = vsub.f32 %v4786_v49, %v3104_v39 }
0x11bc   :  { %v3108_v18 = vmul.f32 %v3106_v28, %v3106_v28 }
0x11be   :  { %v3110_v20 = vsel %vm53_vm0, %v3108_v18, 0.0 }
0x1257   :  { %v2763_v26 = vpop.f32.mrb[88].mxu1 }
0x1258   :  { %v2916_v32 = vpack.c.bf16 %v2763_v26, %v2763_v26  ;;  %v3759_v33 = vpop.f32.mrb[89].mxu1 }
0x1259   :  { %v2766_v15 = vpop.f32.mrb[90].mxu1 }
0x125a   :  { %v3760_v36 = vpop.f32.mrb[91].mxu1  ;;  %3782 = vmatmul.mubr.msk.bf16.vlgmr.msra.gmra.mrb[96].mxu1 %vm265_vm6, %v2916_v32  ;;  %v4038_v15 = vld [vmem:[%s4896_s5] sm:$0xff] }
0x125b   :  { %3792 = vmatpush3.bf16.msra.mxu1 %v4694_v48  ;;  %3793 = vmatprep.mubr.msk.bf16.mxu1 %vm4065_vm1, %v4064_v17  ;;  %v3141_v36 = vrot.slane %v4038_v15, %v1728_v63  ;;  %v3939_v63 = vld [vmem:[%s4895_s4 + $0x10] sm:$0xff]  }
0x125c   :  { %3803 = vmatprep.subr.bf16.mxu1 %v4064_v17 }
0x125e   :  { %v2812_v43 = vpop.f32.mrb[84].mxu0 }
0x125f   :  { %v2961_v24 = vpack.c.bf16 %v2812_v43, %v2812_v43  ;;  %v3765_v31 = vpop.f32.mrb[85].mxu0 }
0x1260   :  { %v2815_v40 = vpop.f32.mrb[86].mxu0 }
0x1261   :  { %v3766_v3 = vpop.f32.mrb[87].mxu0  ;;  %v2861_v41 = vpop.f32.mrb[92].mxu1  ;;  %3788 = vmatmul.mubr.msk.bf16.vlgmr.msra.gmra.mrb[92].mxu0 %vm265_vm6, %v2961_v24  ;;  %v3147_v24 = vrot.slane %v4038_v15, %v2303_v0  ;;  %v3940_v0 = vld [vmem:[%s4895_s4 + $0x18] sm:$0xff]  }
0x1262   :  { %v3006_v38 = vpack.c.bf16 %v2861_v41, %v2861_v41  ;;  %3798 = vmatpush3.bf16.msra.mxu0 %v4702_v60  ;;  %v3771_v52 = vpop.f32.mrb[93].mxu1  ;;  %3799 = vmatprep.mubr.msk.bf16.mxu0 %vm4065_vm1, %v4064_v17  ;;  %v3937_v41 = vld [vmem:[%s4895_s4] sm:$0xff]  }
0x1263   :  { %v2864_v48 = vpop.f32.mrb[94].mxu1  ;;  %3811 = vmatprep.subr.bf16.mxu0 %v4064_v17 }
0x1264   :  { %v3772_v47 = vpop.f32.mrb[95].mxu1  ;;  %3794 = vmatmul.mubr.msk.bf16.vlgmr.msra.gmra.mrb[100].mxu1 %vm265_vm6, %v3006_v38  ;;  %v3938_v38 = vld [vmem:[%s4895_s4 + $0x8] sm:$0xff]  }
0x1265   :  { %3807 = vmatprep.mubr.msk.bf16.mxu1 %vm4065_vm1, %v4064_v17  ;;  %3804 = vmatpush3.bf16.msra.mxu1 %v3937_v41 }
0x1266   :  { %v2910_v42 = vpop.f32.mrb[88].mxu0  ;;  %3805 = vmatprep.subr.bf16.mxu1 %v4064_v17 }
0x1267   :  { %v3051_v50 = vpack.c.bf16 %v2910_v42, %v2910_v42  ;;  %v3777_v30 = vpop.f32.mrb[89].mxu0 }
0x1268   :  { %v2913_v51 = vpop.f32.mrb[90].mxu0 }
0x1269   :  { %v3778_v53 = vpop.f32.mrb[91].mxu0  ;;  %3800 = vmatmul.mubr.msk.bf16.vlgmr.msra.gmra.mrb[96].mxu0 %vm265_vm6, %v3051_v50  ;;  %3806 = vmatpush3.bf16.msra.mxu1 %v3938_v38 }
0x126a   :  { %3819 = vmatprep.mubr.msk.bf16.mxu0 %vm4065_vm1, %v4064_v17  ;;  %3812 = vmatpush3.bf16.msra.mxu0 %v3939_v63 }
0x126b   :  { %3813 = vmatprep.subr.bf16.mxu0 %v4064_v17 }
0x126e   :  { %3814 = vmatpush3.bf16.msra.mxu0 %v3940_v0 }
0x126f   :  { %3815 = vmatprep.subr.bf16.mxu0 %v4064_v17 }
0x132d   :  { %v2954_v60 = vpop.f32.mrb[96].mxu1 }
0x132e   :  { %v3783_v2 = vpop.f32.mrb[97].mxu1  ;;  %v2960_v62 = vadd.f32 %v2954_v60, %v4747_v8 }
0x132f   :  { %v2957_v6 = vpop.f32.mrb[98].mxu1 }
0x1330   :  { %v3784_v61 = vpop.f32.mrb[99].mxu1 }
0x1334   :  { %v2999_v1 = vpop.f32.mrb[92].mxu0 }
0x1335   :  { %v3005_v14 = vadd.f32 %v2999_v1, %v2960_v62  ;;  %v3789_v19 = vpop.f32.mrb[93].mxu0  ;;  %v3941_v1 = vld [vmem:[%s4895_s4 + $0x20] sm:$0xff]  }
0x1336   :  { %v3002_v21 = vpop.f32.mrb[94].mxu0  ;;  %3816 = vmatpush3.bf16.msra.mxu0 %v3941_v1  ;;  %v4039_v19 = vld [vmem:[%s4896_s5 + $0x8] sm:$0xff] }
0x1337   :  { %v3790_v9 = vpop.f32.mrb[95].mxu0  ;;  %v3044_v46 = vpop.f32.mrb[100].mxu1  ;;  %3817 = vmatprep.subr.bf16.mxu0 %v4064_v17  ;;  %v3154_v7 = vrot.slane %v4039_v19, %v166_v55 }
0x1338   :  { %v3050_v11 = vadd.f32 %v3044_v46, %v3005_v14  ;;  %v3795_v12 = vpop.f32.mrb[101].mxu1  ;;  %v3942_v14 = vld [vmem:[%s4895_s4 + $0x28] sm:$0xff]   ;;  %s4073_s4 = smov [#allocation2]  }
0x1339   :  { %v3047_v35 = vpop.f32.mrb[102].mxu1  ;;  %s3296_s5 = sshll.u32 %s4073_s4, 4  ;;  %s3297_s5 = int_to_ptr.vmem [resolvable:$true] %s3296_s5 }
0x133a   :  { %v3796_v44 = vpop.f32.mrb[103].mxu1  ;;  %3818 = vmatpush3.bf16.msra.mxu0 %v3942_v14  ;;  %s4040_s26 = scalar_lea.vmem %s3297_s5, 256  ;;  %p4045_p1 = scmp.lt.s32.totalorder %s3297_s5, %s3297_s5 }
0x133b   :  { %p4041_p0 = scmp.ne.s32.totalorder %s3297_s5, %s4040_s26  ;;  %p4046_p2 = scmp.lt.s32.totalorder %s4040_s26, %s4040_s26 }
0x133c   :  { %v3089_v29 = vpop.f32.mrb[96].mxu0 }
0x133d   :  { %v3095_v54 = vadd.f32 %v3089_v29, %v3050_v11  ;;  %v3801_v37 = vpop.f32.mrb[97].mxu0  ;;  %v3217_v29 = vrot.slane %v4039_v19, %v172_v23  ;;  %p4047_p3 = por %p4046_p2, %p4045_p1 }
0x133e   :  { %v3092_v13 = vpop.f32.mrb[98].mxu0 }
0x133f   :  { %v4831_v8 = vadd.f32 %v3095_v54, %v4478_v34  ;;  %v3802_v16 = vpop.f32.mrb[99].mxu0  ;;  %p4048_p4 = pnand %p4047_p3, %p4041_p0 }
0x1341   :  { %v3101_v59 = vsel %vm53_vm0, %v4831_v8, 0.0 }
0x1342   :  { %3102 = vadd.xlane.f32.xlu0 %v3101_v59 }
0x1346   :  { %3111 = vadd.xlane.f32.xlu0 %v3110_v20 }
0x13cf   :  { %v3103_v25 = vpop.xlane.xlu0 %3102 }
0x13d0   :  { %v3105_v27 = vmul.f32 0.03125, %v3103_v25 }
0x13d2   :  { %v3107_v57 = vsub.f32 %v4831_v8, %v3105_v27 }
0x13d3   :  { %v3112_v56 = vpop.xlane.xlu0 %3111 }
0x13d4   :  { %v3116_v45 = vmul.f32 0.032258064, %v3112_v56  ;;  %v3109_v5 = vmul.f32 %v3107_v57, %v3107_v57 }
0x13d6   :  { %4023 = vrsqrt.f32 %v3116_v45  ;;  %v3113_v34 = vsel %vm53_vm0, %v3109_v5, 0.0  ;;  %vm3120_vm1 = vcmp.eq.f32.partialorder %v3116_v45, inf  ;;  %v3123_v10 = vand.u32 2147483648, %v3116_v45 }
0x13d7   :  { %3114 = vadd.xlane.f32.xlu0 %v3113_v34  ;;  %vm3122_vm2 = vcmp.eq.f32.partialorder %v3116_v45, 0.0 }
0x13e0   :  { %v4024_v58 = vpop.eup %4023 }
0x13e1   :  { %v3119_v4 = vmul.f32 %v4024_v58, %v3116_v45 }
0x13e3   :  { %v3121_v26 = vsel %vm3120_vm1, %v3116_v45, %v3119_v4 }
0x13e4   :  { %v3124_v32 = vsel %vm3122_vm2, %v3123_v10, %v3121_v26 }
0x13e5   :  { %v3132_v33 = vadd.f32 1e-06, %v3124_v32 }
0x13e7   :  { %4025 = vrcp.f32 %v3132_v33 }
0x13f1   :  { %v4026_v43 = vpop.eup %4025 }
0x13f2   :  { %v3136_v31 = vmul.f32 %v4026_v43, %v3106_v28 }
0x13f4   :  { %v3142_v40 = vmul.f32 %v3141_v36, %v3136_v31 }
0x13f6   :  { %v3148_v3 = vadd.f32 %v3147_v24, %v3142_v40 }
0x1464   :  { %v3115_v52 = vpop.xlane.xlu0 %3114 }
0x1465   :  { %v3117_v48 = vmul.f32 0.032258064, %v3115_v52 }
0x1467   :  { %4027 = vrsqrt.f32 %v3117_v48  ;;  %vm3127_vm3 = vcmp.eq.f32.partialorder %v3117_v48, inf  ;;  %v3130_v50 = vand.u32 2147483648, %v3117_v48  ;;  %vm3129_vm4 = vcmp.eq.f32.partialorder %v3117_v48, 0.0 }
0x1471   :  { %v4028_v47 = vpop.eup %4027 }
0x1472   :  { %v3126_v42 = vmul.f32 %v4028_v47, %v3117_v48 }
0x1474   :  { %v3128_v30 = vsel %vm3127_vm3, %v3117_v48, %v3126_v42 }
0x1475   :  { %v3131_v51 = vsel %vm3129_vm4, %v3130_v50, %v3128_v30 }
0x1476   :  { %v3133_v53 = vadd.f32 1e-06, %v3131_v51 }
0x1478   :  { %4029 = vrcp.f32 %v3133_v53 }
0x1482   :  { %v4030_v60 = vpop.eup %4029 }
0x1483   :  { %v3137_v2 = vmul.f32 %v4030_v60, %v3107_v57 }
0x1485   :  { %v3143_v6 = vmul.f32 %v3141_v36, %v3137_v2 }
0x1487   :  { %v3149_v61 = vadd.f32 %v3147_v24, %v3143_v6 }
0x1489   :  { %v3150_v62 = vpack.c.bf16 %v3149_v61, %v3148_v3 }
0x148b   :  { %3808 = vmatmul.mubr.msk.bf16.vlgmr.msra.gmra.mrb[104].mxu1 %vm53_vm0, %v3150_v62 }
0x155e   :  { %v3204_v21 = vpop.f32.mrb[104].mxu1 }
0x155f   :  { %v3205_v9 = vadd.f32 %v3204_v21, %v3154_v7  ;;  %v3809_v46 = vpop.f32.mrb[105].mxu1 }
0x1560   :  { %v3207_v11 = vpop.f32.mrb[106].mxu1 }
0x1561   :  { %v3208_v12 = vadd.f32 %v3207_v11, %v3154_v7  ;;  %v3810_v39 = vpop.f32.mrb[107].mxu1  ;;  %v3211_v35 = vmax.f32 %v3205_v9, 0.0 }
0x1563   :  { %v3212_v17 = vmax.f32 %v3208_v12, 0.0 }
0x1565   :  { %v3213_v44 = vpack.c.bf16 %v3212_v17, %v3211_v35 }
0x1567   :  { %3820 = vmatmul.mubr.msk.bf16.vlgmr.msra.gmra.mrb[100].mxu0 %vm3242_vm5, %v3213_v44 }
0x163a   :  { %v3280_v28 = vpop.f32.mrb[100].mxu0 }
0x163b   :  { %v3281_v54 = vadd.f32 %v3280_v28, %v3217_v29  ;;  %v3821_v37 = vpop.f32.mrb[101].mxu0 }
0x163c   :  { %v3283_v55 = vpop.f32.mrb[102].mxu0 }
0x163d   :  { %v3287_v13 = vadd.f32 %v3281_v54, %v4786_v49  ;;  %v3284_v16 = vadd.f32 %v3283_v55, %v3217_v29  ;;  %v3822_v59 = vpop.f32.mrb[103].mxu0 }
0x163f   :  { %3289 = vst.msk [vmem:[#allocation2] sm:$0xff] %vm53_vm0, %v3287_v13  ;;  %v3288_v18 = vadd.f32 %v3284_v16, %v4831_v8 }
0x1641   :  { %3290 = vst.msk [vmem:[#allocation2 + $0x8] sm:$0xff] %vm53_vm0, %v3288_v18 }
0x1642   :  { %4051 = shalt.err (!%p4048_p4)
}
0x1643   :  { %s4052_s28 = scalar_lea.hbm %s4897_s6, 256 }
0x1644   :  { %p4053_p5 = scmp.ne.s32.totalorder %s4897_s6, %s4052_s28  ;;  %p4056_p6 = scmp.lt.u32.totalorder %s4052_s28, %s4897_s6 }
0x1646   :  { %p4058_p7 = pnand %p4056_p6, %p4053_p5 }
0x1648   :  { %4061 = shalt.err (!%p4058_p7)
}
0x1649   :  { %s4074_s8 = smov 128   ;;  %s4075_s9 = smov 8  }
0x164a   :  { %3302 = dma.vmem_to_hbm [thread:$0]  %s3297_s5, 256, %s4897_s6, [#allocation3], %s4074_s8, %s4074_s8, %s4075_s9  }
0x164b   :  { %4062 = dma.done.wait [#allocation3], 256  }
0x164c   :  { %4063 = vsyncadd [#allocation3], 4294967040 }
0x164d   :  { %3306 = vsyncpa [#allocation3], 1 }

</bundles_post_ra>
